<compile_context>
chip_gen: v6e
topology: v6e:2x2x1
jax: 0.10.0
libtpu: 0.0.40
codegen_flags: <defaults>
</compile_context>

<pallas_src>
import numpy as np
import jax
import jax.numpy as jnp
from jax.experimental import pallas as pl
from jax.experimental.pallas import tpu as pltpu

# ----------------------------- configuration ------------------------------
L_3D = 4
L_VIEW = 2
W_FEAT = 32          # hidden width of mlp_feat
W_RGB = 32           # hidden width of mlp_rgb
D3 = 3 + 6 * L_3D    # 27 (raw + sin/cos)
DV = 3 + 6 * L_VIEW  # 15
ENC2 = 64            # packed encoding width; lane c -> input channel c % 6
ONES_LANE = 63       # spare lane forced to 1.0 (bias folding in fused matmul)

# rows of the packed `consts` slab
ROW_FREQ, ROW_PHASE, ROW_RAW, ROW_B1, ROW_B3, ROW_BR1 = range(6)
CONST_ROWS = 8


def _round_up(x, m):
    return ((x + m - 1) // m) * m


# ------------------------------ Pallas kernel -----------------------------
def nerf_mlp_kernel(pts_ref, view_ref, wenc_ref, wmid_ref, const_ref, out_ref):
    C = const_ref[...]                                   # (8, 64) f32
    freq = C[ROW_FREQ:ROW_FREQ + 1, :]                   # (1, 64)
    phase = C[ROW_PHASE:ROW_PHASE + 1, :]                # (1, 64): pi/2 on cos lanes
    is_raw = C[ROW_RAW:ROW_RAW + 1, :] > 0.5             # (1, 64)

    # ---- fused positional encoding for pts AND view, single sin pass -----
    # lane c of `t` holds channel (c % 6) of [x, y, z, ux, uy, uz]; the
    # per-lane freq/phase/raw tables assign raw / sin(f_l .) / cos(f_l .)
    # meanings (cos via +pi/2 phase). Unused lanes produce exactly 0 and hit
    # zero weight rows; lane ONES_LANE produces 1.0 for bias folding.
    inp6 = jnp.concatenate([pts_ref[...], view_ref[...]], axis=-1)   # (TM, 6) f32
    t = jnp.concatenate([inp6] * 11, axis=-1)[:, :ENC2]              # (TM, 64)
    trig = jnp.sin(t * freq + phase)                                 # one EUP pass
    enc = jnp.where(is_raw, t, trig).astype(jnp.bfloat16)            # (TM, 64)

    def mm(a, w):
        # bf16 operands, f32 accumulation on the MXU
        return jnp.dot(a.astype(jnp.bfloat16), w,
                       preferred_element_type=jnp.float32)

    # fused input matmul: [x_enc@W0 + b0 | x_enc@W2_skip + b2 | v_enc@Wr0_view + br0]
    fused = jnp.dot(enc, wenc_ref[...], preferred_element_type=jnp.float32)  # (TM, 96)
    h0 = jnp.maximum(fused[:, 0:32], 0.0)
    x_skip = fused[:, 32:64]                              # already includes b2
    v_rgb = fused[:, 64:96]                               # already includes br0

    # mlp_feat layers 1, 2 (skip), 3 (last)
    h1 = jnp.maximum(mm(h0, wmid_ref[0])[:, 0:32] + C[ROW_B1:ROW_B1 + 1, 0:32], 0.0)
    h2 = jnp.maximum(mm(h1, wmid_ref[1])[:, 0:32] + x_skip, 0.0)
    r3 = mm(h2, wmid_ref[2]) + C[ROW_B3:ROW_B3 + 1, :]    # (TM, 64): 0:32 feat, 32 density
    feat = jnp.maximum(r3[:, 0:32], 0.0)
    density = jax.nn.softplus(r3[:, 32:33])               # opt.arch.density_activ

    # mlp_rgb
    h3 = jnp.maximum(mm(feat, wmid_ref[3])[:, 0:32] + v_rgb, 0.0)
    rgb = jax.nn.sigmoid(mm(h3, wmid_ref[4])[:, 0:3] + C[ROW_BR1:ROW_BR1 + 1, 0:3])

    out_ref[...] = jnp.concatenate([rgb, density], axis=-1)   # (TM, 4) single store


def run_nerf_mlp(pts_flat, view_flat, packed, tm=2048):
    """pts_flat / view_flat: (M, 3) f32. Returns (M, 4) = [rgb | density]."""
    w_enc, w_mid, consts = packed
    M = pts_flat.shape[0]
    # Tile: multiple of 8, as large as requested, but keep >= 2 grid steps
    # (megacore: two TensorCores shard the "parallel" axis).
    tm_eff = max(8, min(_round_up(tm, 8), _round_up(pl.cdiv(M, 2), 8)))
    M_pad = _round_up(M, tm_eff)
    if M_pad != M:
        pts_flat = jnp.pad(pts_flat, ((0, M_pad - M), (0, 0)))
        view_flat = jnp.pad(view_flat, ((0, M_pad - M), (0, 0)))

    out = pl.pallas_call(
        nerf_mlp_kernel,
        out_shape=jax.ShapeDtypeStruct((M_pad, 4), jnp.float32),
        grid=(M_pad // tm_eff,),
        in_specs=[
            pl.BlockSpec((tm_eff, 3), lambda i: (i, 0)),
            pl.BlockSpec((tm_eff, 3), lambda i: (i, 0)),
            pl.BlockSpec(w_enc.shape, lambda i: (0, 0)),       # resident
            pl.BlockSpec(w_mid.shape, lambda i: (0, 0, 0)),    # resident
            pl.BlockSpec(consts.shape, lambda i: (0, 0)),      # resident
        ],
        out_specs=pl.BlockSpec((tm_eff, 4), lambda i: (i, 0)),
        compiler_params=pltpu.CompilerParams(
            dimension_semantics=("parallel",),
            vmem_limit_bytes=32 * 1024 * 1024),
    )(pts_flat, view_flat, w_enc, w_mid, consts)
    return out[:M]


# ------------------------------ JAX glue -----------------------------------
def nerf_forward(packed, points_3D_samples, ray, tm=2048):
    """points_3D_samples: (B, N, NS, 3), ray: (B, N, 3)."""
    B, N, NS, _ = points_3D_samples.shape
    ray_unit = ray / jnp.maximum(jnp.linalg.norm(ray, axis=-1, keepdims=True), 1e-12)
    view = jnp.broadcast_to(ray_unit[..., None, :], points_3D_samples.shape)
    M = B * N * NS
    out = run_nerf_mlp(points_3D_samples.reshape(M, 3), view.reshape(M, 3),
                       packed, tm=tm)
    # TODO(synk): density_noise_reg (train-mode gaussian noise) and BARF
    # coarse-to-fine weighting (barf_c2f != None) are not implemented; this is
    # the eval-mode / barf_c2f=None (progress=1.0) path of the module.
    return dict(rgb_samples=out[:, 0:3].reshape(B, N, NS, 3),
                density_samples=out[:, 3].reshape(B, N, NS))


# --------------------------- deterministic init -----------------------------
def _xavier(key, out_dim, in_dim, gain=1.0):
    bound = gain * np.sqrt(6.0 / (in_dim + out_dim))
    return jax.random.uniform(key, (out_dim, in_dim), jnp.float32, -bound, bound)


def init_params(key):
    """Logical (unpacked, f32) parameters mirroring tensorflow_init_weights."""
    relu_gain = float(np.sqrt(2.0))
    ks = jax.random.split(key, 7)
    w0 = _xavier(ks[0], W_FEAT, D3, relu_gain)                 # (32, 27)
    w1 = _xavier(ks[1], W_FEAT, W_FEAT, relu_gain)             # (32, 32)
    w2 = _xavier(ks[2], W_FEAT, W_FEAT + D3, relu_gain)        # (32, 59) skip
    w3_d = _xavier(ks[3], 1, W_FEAT, 1.0)                      # out='first': density row
    w3_f = _xavier(ks[4], W_FEAT, W_FEAT, relu_gain)           # feat rows
    w3 = jnp.concatenate([w3_d, w3_f], axis=0)                 # (33, 32)
    wr0 = _xavier(ks[5], W_RGB, W_FEAT + DV, relu_gain)        # (32, 47)
    wr1 = _xavier(ks[6], 3, W_RGB, 1.0)                        # out='all'

    def T(w):   # (out, in) -> (in, out)
        return jnp.asarray(w).T

    def zb(n):
        return jnp.zeros((n,), jnp.float32)

    return dict(
        w0=T(w0), b0=zb(W_FEAT),
        w1=T(w1), b1=zb(W_FEAT),
        w2f=T(w2)[:W_FEAT], w2s=T(w2)[W_FEAT:], b2=zb(W_FEAT),
        w3=T(w3), b3=zb(W_FEAT + 1),                # (32, 33): col 0 = density
        wr0f=T(wr0)[:W_FEAT], wr0v=T(wr0)[W_FEAT:], br0=zb(W_RGB),
        wr1=T(wr1), br1=zb(3),
    )


def _enc_lane_map():
    """Per-lane layout of the packed 64-wide encoding.

    Lane c holds channel c % 6 of [x, y, z, ux, uy, uz]; block b = c // 6 gives
    the meaning (raw / sin f_l / cos f_l).  Returns (src, col, freq, phase, raw)
    where src in {'x','v','one',None} and col is the logical posenc column.
    """
    freq = np.zeros(ENC2, np.float64)
    phase = np.zeros(ENC2, np.float64)
    raw = np.zeros(ENC2, np.float32)
    src = [None] * ENC2
    col = [0] * ENC2
    for c in range(ENC2):
        ch, b = c % 6, c // 6
        if ch < 3:                                       # 3D-point channel
            if b == 0:                                   # raw
                src[c], col[c], raw[c], freq[c] = 'x', ch, 1.0, 1.0
            elif 1 <= b <= L_3D:                         # sin, l = b-1
                l = b - 1
                src[c], col[c], freq[c] = 'x', 3 + 6 * l + ch, np.pi * (2.0 ** l)
            elif L_3D + 1 <= b <= 2 * L_3D:              # cos, l = b-1-L_3D
                l = b - 1 - L_3D
                src[c], col[c] = 'x', 3 + 6 * l + 3 + ch
                freq[c], phase[c] = np.pi * (2.0 ** l), np.pi / 2
        else:                                            # view channel
            chv = ch - 3
            if b == 0:
                src[c], col[c], raw[c], freq[c] = 'v', chv, 1.0, 1.0
            elif 1 <= b <= L_VIEW:
                l = b - 1
                src[c], col[c], freq[c] = 'v', 3 + 6 * l + chv, np.pi * (2.0 ** l)
            elif L_VIEW + 1 <= b <= 2 * L_VIEW:
                l = b - 1 - L_VIEW
                src[c], col[c] = 'v', 3 + 6 * l + 3 + chv
                freq[c], phase[c] = np.pi * (2.0 ** l), np.pi / 2
    # spare lane forced to exactly 1.0: sin(0 + pi/2) = 1  (bias folding)
    src[ONES_LANE], col[ONES_LANE] = 'one', 0
    freq[ONES_LANE], phase[ONES_LANE], raw[ONES_LANE] = 0.0, np.pi / 2, 0.0
    return src, col, freq.astype(np.float32), phase.astype(np.float32), raw


def pack_params(p):
    """Pack logical params into the 3 kernel slabs (weights in bf16)."""
    f = lambda a: np.asarray(a, np.float32)
    src, col, freq, phase, raw = _enc_lane_map()

    W0, W2s, Wr0v = f(p["w0"]), f(p["w2s"]), f(p["wr0v"])   # (27,32) (27,32) (15,32)

    # fused encoder weight: cols 0:32 -> h0_pre, 32:64 -> x_skip, 64:96 -> v_rgb
    w_enc = np.zeros((ENC2, 96), np.float32)
    for c in range(ENC2):
        if src[c] == 'x':
            w_enc[c, 0:32] = W0[col[c]]
            w_enc[c, 32:64] = W2s[col[c]]
        elif src[c] == 'v':
            w_enc[c, 64:96] = Wr0v[col[c]]
        elif src[c] == 'one':                        # folded biases
            w_enc[c, 0:32] = f(p["b0"])
            w_enc[c, 32:64] = f(p["b2"])
            w_enc[c, 64:96] = f(p["br0"])

    w_mid = np.zeros((5, 32, 64), np.float32)
    w_mid[0, :, 0:32] = f(p["w1"])
    w_mid[1, :, 0:32] = f(p["w2f"])
    w3 = f(p["w3"])
    w_mid[2, :, 0:32] = w3[:, 1:]                    # feat columns first (lane aligned)
    w_mid[2, :, 32] = w3[:, 0]                       # density column last
    w_mid[3, :, 0:32] = f(p["wr0f"])
    w_mid[4, :, 0:3] = f(p["wr1"])

    consts = np.zeros((CONST_ROWS, ENC2), np.float32)
    consts[ROW_FREQ, :] = freq
    consts[ROW_PHASE, :] = phase
    consts[ROW_RAW, :] = raw
    consts[ROW_B1, 0:32] = f(p["b1"])
    b3 = f(p["b3"])
    consts[ROW_B3, 0:32] = b3[1:]
    consts[ROW_B3, 32] = b3[0]
    consts[ROW_BR1, 0:3] = f(p["br1"])

    return (jnp.asarray(w_enc, dtype=jnp.bfloat16),
            jnp.asarray(w_mid, dtype=jnp.bfloat16),
            jnp.asarray(consts, dtype=jnp.float32))


# ------------------------------ reference ----------------------------------
def _posenc_ref(x, L):
    """[raw | sin(f0 x) | cos(f0 x) | sin(f1 x) | cos(f1 x) | ...]."""
    outs = [x]
    for l in range(L):
        freq = np.pi * (2.0 ** l)
        outs.append(jnp.sin(x * freq))
        outs.append(jnp.cos(x * freq))
    return jnp.concatenate(outs, axis=-1)


def nerf_forward_ref(params, points_3D_samples, ray):
    B, N, NS, _ = points_3D_samples.shape
    x = _posenc_ref(points_3D_samples, L_3D).reshape(-1, D3)
    ray_unit = ray / jnp.maximum(jnp.linalg.norm(ray, axis=-1, keepdims=True), 1e-12)
    ray_samples = jnp.broadcast_to(ray_unit[..., None, :], points_3D_samples.shape)
    v = _posenc_ref(ray_samples, L_VIEW).reshape(-1, DV)

    p = params
    h = jax.nn.relu(x @ p["w0"] + p["b0"])
    h = jax.nn.relu(h @ p["w1"] + p["b1"])
    h = jax.nn.relu(h @ p["w2f"] + x @ p["w2s"] + p["b2"])        # skip layer
    o = h @ p["w3"] + p["b3"]
    density = jax.nn.softplus(o[:, 0])
    feat = jax.nn.relu(o[:, 1:])
    h = jax.nn.relu(feat @ p["wr0f"] + v @ p["wr0v"] + p["br0"])  # view-dep layer
    rgb = jax.nn.sigmoid(h @ p["wr1"] + p["br1"])
    return rgb.reshape(B, N, NS, 3), density.reshape(B, N, NS)


# --------------------------------- main -------------------------------------
if __name__ == "__main__":
    key = jax.random.PRNGKey(0)
    k_pts, k_ray, k_par = jax.random.split(key, 3)

    B, N, NS = 2, 8, 8
    points_3D_samples = jax.random.normal(k_pts, (B, N, NS, 3), jnp.float32)
    ray = jax.random.normal(k_ray, (B, N, 3), jnp.float32)
    params = init_params(k_par)
    packed = pack_params(params)

    pred = nerf_forward(packed, points_3D_samples, ray)
    rgb = jax.block_until_ready(pred["rgb_samples"])
    density = jax.block_until_ready(pred["density_samples"])

    rgb_ref, density_ref = nerf_forward_ref(params, points_3D_samples, ray)
    assert rgb.shape == (B, N, NS, 3) and density.shape == (B, N, NS)
    # Kernel uses bf16 matmul operands (f32 accumulation) vs pure-f32 reference,
    # so the tolerance is relaxed accordingly.
    np.testing.assert_allclose(np.asarray(rgb), np.asarray(rgb_ref),
                               atol=5e-2, rtol=5e-2)
    np.testing.assert_allclose(np.asarray(density), np.asarray(density_ref),
                               atol=5e-2, rtol=5e-2)

    print("KERNEL_OK")
</pallas_src>

<mosaic_0001>
module attributes {stable_mosaic.version = 11 : i64} {
  func.func @nerf_mlp_kernel(%arg0: i32, %arg1: memref<64x3xf32, #tpu.memory_space<vmem>>, %arg2: memref<64x3xf32, #tpu.memory_space<vmem>>, %arg3: memref<64x96xbf16, #tpu.memory_space<vmem>>, %arg4: memref<5x32x64xbf16, #tpu.memory_space<vmem>>, %arg5: memref<8x64xf32, #tpu.memory_space<vmem>>, %arg6: memref<64x4xf32, #tpu.memory_space<vmem>>) attributes {dimension_semantics = [#tpu.dimension_semantics<parallel>], iteration_bounds = array<i64: 2>, scalar_prefetch = 0 : i64, scratch_operands = 0 : i64, tpu.core_type = #tpu.core_type<tc>, window_params = [{transform_indices = @transform_0, window_bounds = array<i64: 64, 3>}, {transform_indices = @transform_1, window_bounds = array<i64: 64, 3>}, {pipeline_mode = #tpu.pipeline_mode<synchronous>, transform_indices = @transform_2, window_bounds = array<i64: 64, 96>}, {pipeline_mode = #tpu.pipeline_mode<synchronous>, transform_indices = @transform_3, window_bounds = array<i64: 5, 32, 64>}, {pipeline_mode = #tpu.pipeline_mode<synchronous>, transform_indices = @transform_4, window_bounds = array<i64: 8, 64>}, {transform_indices = @transform_5, window_bounds = array<i64: 64, 4>}]} {
    %c0 = arith.constant 0 : index
    %c0_0 = arith.constant 0 : index
    %0 = vector.load %arg5[%c0, %c0_0] : memref<8x64xf32, #tpu.memory_space<vmem>>, vector<8x64xf32>
    %1 = vector.extract_strided_slice %0 {offsets = [0, 0], sizes = [1, 64], strides = [1, 1]} : vector<8x64xf32> to vector<1x64xf32>
    %2 = vector.extract_strided_slice %0 {offsets = [1, 0], sizes = [1, 64], strides = [1, 1]} : vector<8x64xf32> to vector<1x64xf32>
    %3 = vector.extract_strided_slice %0 {offsets = [2, 0], sizes = [1, 64], strides = [1, 1]} : vector<8x64xf32> to vector<1x64xf32>
    %cst = arith.constant 5.000000e-01 : f32
    %4 = vector.broadcast %cst : f32 to vector<1x64xf32>
    %5 = arith.cmpf ogt, %3, %4 : vector<1x64xf32>
    %c0_1 = arith.constant 0 : index
    %c0_2 = arith.constant 0 : index
    %6 = vector.load %arg1[%c0_1, %c0_2] : memref<64x3xf32, #tpu.memory_space<vmem>>, vector<64x3xf32>
    %c0_3 = arith.constant 0 : index
    %c0_4 = arith.constant 0 : index
    %7 = vector.load %arg2[%c0_3, %c0_4] : memref<64x3xf32, #tpu.memory_space<vmem>>, vector<64x3xf32>
    %8 = tpu.concatenate %6, %7 in 1 : vector<64x3xf32>, vector<64x3xf32> -> vector<64x6xf32>
    %9 = tpu.concatenate %8, %8, %8, %8, %8, %8, %8, %8, %8, %8, %8 in 1 : vector<64x6xf32>, vector<64x6xf32>, vector<64x6xf32>, vector<64x6xf32>, vector<64x6xf32>, vector<64x6xf32>, vector<64x6xf32>, vector<64x6xf32>, vector<64x6xf32>, vector<64x6xf32>, vector<64x6xf32> -> vector<64x66xf32>
    %10 = vector.extract_strided_slice %9 {offsets = [0, 0], sizes = [64, 64], strides = [1, 1]} : vector<64x66xf32> to vector<64x64xf32>
    %11 = vector.broadcast %1 : vector<1x64xf32> to vector<64x64xf32>
    %12 = arith.mulf %10, %11 : vector<64x64xf32>
    %13 = vector.broadcast %2 : vector<1x64xf32> to vector<64x64xf32>
    %14 = arith.addf %12, %13 : vector<64x64xf32>
    %15 = math.sin %14 : vector<64x64xf32>
    %16 = vector.shape_cast %5 : vector<1x64xi1> to vector<1x64xi1>
    %17 = vector.broadcast %16 : vector<1x64xi1> to vector<64x64xi1>
    %18 = arith.select %17, %10, %15 : vector<64x64xi1>, vector<64x64xf32>
    %19 = arith.truncf %18 : vector<64x64xf32> to vector<64x64xbf16>
    %c0_5 = arith.constant 0 : index
    %c0_6 = arith.constant 0 : index
    %20 = vector.load %arg3[%c0_5, %c0_6] : memref<64x96xbf16, #tpu.memory_space<vmem>>, vector<64x96xbf16>
    %cst_7 = arith.constant dense<0.000000e+00> : vector<64x96xf32>
    %21 = tpu.matmul %19, %20, %cst_7 {dimension_numbers = #tpu.dot_dimension_numbers<[1], [0], [0], [1], [0, 0, 1, 1], [], []>} : vector<64x64xbf16>, vector<64x96xbf16>, vector<64x96xf32> -> vector<64x96xf32>
    %22 = vector.extract_strided_slice %21 {offsets = [0, 0], sizes = [64, 32], strides = [1, 1]} : vector<64x96xf32> to vector<64x32xf32>
    %cst_8 = arith.constant 0.000000e+00 : f32
    %23 = vector.broadcast %cst_8 : f32 to vector<64x32xf32>
    %24 = arith.maximumf %22, %23 : vector<64x32xf32>
    %25 = vector.extract_strided_slice %21 {offsets = [0, 32], sizes = [64, 32], strides = [1, 1]} : vector<64x96xf32> to vector<64x32xf32>
    %26 = vector.extract_strided_slice %21 {offsets = [0, 64], sizes = [64, 32], strides = [1, 1]} : vector<64x96xf32> to vector<64x32xf32>
    %c0_9 = arith.constant 0 : index
    %c0_10 = arith.constant 0 : index
    %c0_11 = arith.constant 0 : index
    %27 = vector.load %arg4[%c0_9, %c0_10, %c0_11] : memref<5x32x64xbf16, #tpu.memory_space<vmem>>, vector<1x32x64xbf16>
    %28 = vector.shape_cast %27 : vector<1x32x64xbf16> to vector<32x64xbf16>
    %29 = arith.truncf %24 : vector<64x32xf32> to vector<64x32xbf16>
    %cst_12 = arith.constant dense<0.000000e+00> : vector<64x64xf32>
    %30 = tpu.matmul %29, %28, %cst_12 {dimension_numbers = #tpu.dot_dimension_numbers<[1], [0], [0], [1], [0, 0, 1, 1], [], []>} : vector<64x32xbf16>, vector<32x64xbf16>, vector<64x64xf32> -> vector<64x64xf32>
    %31 = vector.extract_strided_slice %30 {offsets = [0, 0], sizes = [64, 32], strides = [1, 1]} : vector<64x64xf32> to vector<64x32xf32>
    %32 = vector.extract_strided_slice %0 {offsets = [3, 0], sizes = [1, 32], strides = [1, 1]} : vector<8x64xf32> to vector<1x32xf32>
    %33 = vector.broadcast %32 : vector<1x32xf32> to vector<64x32xf32>
    %34 = arith.addf %31, %33 : vector<64x32xf32>
    %cst_13 = arith.constant 0.000000e+00 : f32
    %35 = vector.broadcast %cst_13 : f32 to vector<64x32xf32>
    %36 = arith.maximumf %34, %35 : vector<64x32xf32>
    %c1 = arith.constant 1 : index
    %c0_14 = arith.constant 0 : index
    %c0_15 = arith.constant 0 : index
    %37 = vector.load %arg4[%c1, %c0_14, %c0_15] : memref<5x32x64xbf16, #tpu.memory_space<vmem>>, vector<1x32x64xbf16>
    %38 = vector.shape_cast %37 : vector<1x32x64xbf16> to vector<32x64xbf16>
    %39 = arith.truncf %36 : vector<64x32xf32> to vector<64x32xbf16>
    %cst_16 = arith.constant dense<0.000000e+00> : vector<64x64xf32>
    %40 = tpu.matmul %39, %38, %cst_16 {dimension_numbers = #tpu.dot_dimension_numbers<[1], [0], [0], [1], [0, 0, 1, 1], [], []>} : vector<64x32xbf16>, vector<32x64xbf16>, vector<64x64xf32> -> vector<64x64xf32>
    %41 = vector.extract_strided_slice %40 {offsets = [0, 0], sizes = [64, 32], strides = [1, 1]} : vector<64x64xf32> to vector<64x32xf32>
    %42 = arith.addf %41, %25 : vector<64x32xf32>
    %cst_17 = arith.constant 0.000000e+00 : f32
    %43 = vector.broadcast %cst_17 : f32 to vector<64x32xf32>
    %44 = arith.maximumf %42, %43 : vector<64x32xf32>
    %c2 = arith.constant 2 : index
    %c0_18 = arith.constant 0 : index
    %c0_19 = arith.constant 0 : index
    %45 = vector.load %arg4[%c2, %c0_18, %c0_19] : memref<5x32x64xbf16, #tpu.memory_space<vmem>>, vector<1x32x64xbf16>
    %46 = vector.shape_cast %45 : vector<1x32x64xbf16> to vector<32x64xbf16>
    %47 = arith.truncf %44 : vector<64x32xf32> to vector<64x32xbf16>
    %cst_20 = arith.constant dense<0.000000e+00> : vector<64x64xf32>
    %48 = tpu.matmul %47, %46, %cst_20 {dimension_numbers = #tpu.dot_dimension_numbers<[1], [0], [0], [1], [0, 0, 1, 1], [], []>} : vector<64x32xbf16>, vector<32x64xbf16>, vector<64x64xf32> -> vector<64x64xf32>
    %49 = vector.extract_strided_slice %0 {offsets = [4, 0], sizes = [1, 64], strides = [1, 1]} : vector<8x64xf32> to vector<1x64xf32>
    %50 = vector.broadcast %49 : vector<1x64xf32> to vector<64x64xf32>
    %51 = arith.addf %48, %50 : vector<64x64xf32>
    %52 = vector.extract_strided_slice %51 {offsets = [0, 0], sizes = [64, 32], strides = [1, 1]} : vector<64x64xf32> to vector<64x32xf32>
    %cst_21 = arith.constant 0.000000e+00 : f32
    %53 = vector.broadcast %cst_21 : f32 to vector<64x32xf32>
    %54 = arith.maximumf %52, %53 : vector<64x32xf32>
    %55 = vector.extract_strided_slice %51 {offsets = [0, 32], sizes = [64, 1], strides = [1, 1]} : vector<64x64xf32> to vector<64x1xf32>
    %cst_22 = arith.constant 0.000000e+00 : f32
    %56 = vector.broadcast %cst_22 : f32 to vector<64x1xf32>
    %57 = arith.maximumf %55, %56 : vector<64x1xf32>
    %58 = vector.broadcast %cst_22 : f32 to vector<64x1xf32>
    %59 = arith.subf %55, %58 : vector<64x1xf32>
    %60 = arith.cmpf one, %59, %59 : vector<64x1xf32>
    %61 = vector.broadcast %cst_22 : f32 to vector<64x1xf32>
    %62 = arith.addf %55, %61 : vector<64x1xf32>
    %63 = math.absf %59 : vector<64x1xf32>
    %cst_23 = arith.constant 0.000000e+00 : f32
    %64 = vector.broadcast %cst_23 : f32 to vector<64x1xf32>
    %65 = arith.subf %64, %63 : vector<64x1xf32>
    %66 = math.exp %65 : vector<64x1xf32>
    %67 = math.log1p %66 : vector<64x1xf32>
    %68 = arith.addf %57, %67 : vector<64x1xf32>
    %69 = arith.select %60, %62, %68 : vector<64x1xi1>, vector<64x1xf32>
    %c3 = arith.constant 3 : index
    %c0_24 = arith.constant 0 : index
    %c0_25 = arith.constant 0 : index
    %70 = vector.load %arg4[%c3, %c0_24, %c0_25] : memref<5x32x64xbf16, #tpu.memory_space<vmem>>, vector<1x32x64xbf16>
    %71 = vector.shape_cast %70 : vector<1x32x64xbf16> to vector<32x64xbf16>
    %72 = arith.truncf %54 : vector<64x32xf32> to vector<64x32xbf16>
    %cst_26 = arith.constant dense<0.000000e+00> : vector<64x64xf32>
    %73 = tpu.matmul %72, %71, %cst_26 {dimension_numbers = #tpu.dot_dimension_numbers<[1], [0], [0], [1], [0, 0, 1, 1], [], []>} : vector<64x32xbf16>, vector<32x64xbf16>, vector<64x64xf32> -> vector<64x64xf32>
    %74 = vector.extract_strided_slice %73 {offsets = [0, 0], sizes = [64, 32], strides = [1, 1]} : vector<64x64xf32> to vector<64x32xf32>
    %75 = arith.addf %74, %26 : vector<64x32xf32>
    %cst_27 = arith.constant 0.000000e+00 : f32
    %76 = vector.broadcast %cst_27 : f32 to vector<64x32xf32>
    %77 = arith.maximumf %75, %76 : vector<64x32xf32>
    %c4 = arith.constant 4 : index
    %c0_28 = arith.constant 0 : index
    %c0_29 = arith.constant 0 : index
    %78 = vector.load %arg4[%c4, %c0_28, %c0_29] : memref<5x32x64xbf16, #tpu.memory_space<vmem>>, vector<1x32x64xbf16>
    %79 = vector.shape_cast %78 : vector<1x32x64xbf16> to vector<32x64xbf16>
    %80 = arith.truncf %77 : vector<64x32xf32> to vector<64x32xbf16>
    %cst_30 = arith.constant dense<0.000000e+00> : vector<64x64xf32>
    %81 = tpu.matmul %80, %79, %cst_30 {dimension_numbers = #tpu.dot_dimension_numbers<[1], [0], [0], [1], [0, 0, 1, 1], [], []>} : vector<64x32xbf16>, vector<32x64xbf16>, vector<64x64xf32> -> vector<64x64xf32>
    %82 = vector.extract_strided_slice %81 {offsets = [0, 0], sizes = [64, 3], strides = [1, 1]} : vector<64x64xf32> to vector<64x3xf32>
    %83 = vector.extract_strided_slice %0 {offsets = [5, 0], sizes = [1, 3], strides = [1, 1]} : vector<8x64xf32> to vector<1x3xf32>
    %84 = vector.broadcast %83 : vector<1x3xf32> to vector<64x3xf32>
    %85 = arith.addf %82, %84 : vector<64x3xf32>
    %86 = arith.negf %85 : vector<64x3xf32>
    %87 = math.exp %86 : vector<64x3xf32>
    %cst_31 = arith.constant 1.000000e+00 : f32
    %88 = vector.broadcast %cst_31 : f32 to vector<64x3xf32>
    %89 = arith.addf %88, %87 : vector<64x3xf32>
    %90 = arith.divf %88, %89 : vector<64x3xf32>
    %91 = tpu.concatenate %90, %69 in 1 : vector<64x3xf32>, vector<64x1xf32> -> vector<64x4xf32>
    %c0_32 = arith.constant 0 : index
    %c0_33 = arith.constant 0 : index
    %92 = vector.load %arg6[%c0_32, %c0_33] : memref<64x4xf32, #tpu.memory_space<vmem>>, vector<64x4xf32>
    tpu.vector_store %arg6[%c0_32, %c0_33], %91 {strides = array<i32>} : memref<64x4xf32, #tpu.memory_space<vmem>>, vector<64x4xf32>,
    return
  }
  func.func @transform_0(%arg0: i32) -> (i32, i32) {
    %c0_i32 = arith.constant 0 : i32
    %c0_i32_0 = arith.constant 0 : i32
    return %arg0, %c0_i32 : i32, i32
  }
  func.func @transform_1(%arg0: i32) -> (i32, i32) {
    %c0_i32 = arith.constant 0 : i32
    %c0_i32_0 = arith.constant 0 : i32
    return %arg0, %c0_i32 : i32, i32
  }
  func.func @transform_2(%arg0: i32) -> (i32, i32) {
    %c0_i32 = arith.constant 0 : i32
    %c0_i32_0 = arith.constant 0 : i32
    %c0_i32_1 = arith.constant 0 : i32
    return %c0_i32, %c0_i32_0 : i32, i32
  }
  func.func @transform_3(%arg0: i32) -> (i32, i32, i32) {
    %c0_i32 = arith.constant 0 : i32
    %c0_i32_0 = arith.constant 0 : i32
    %c0_i32_1 = arith.constant 0 : i32
    %c0_i32_2 = arith.constant 0 : i32
    return %c0_i32, %c0_i32_0, %c0_i32_1 : i32, i32, i32
  }
  func.func @transform_4(%arg0: i32) -> (i32, i32) {
    %c0_i32 = arith.constant 0 : i32
    %c0_i32_0 = arith.constant 0 : i32
    %c0_i32_1 = arith.constant 0 : i32
    return %c0_i32, %c0_i32_0 : i32, i32
  }
  func.func @transform_5(%arg0: i32) -> (i32, i32) {
    %c0_i32 = arith.constant 0 : i32
    %c0_i32_0 = arith.constant 0 : i32
    return %arg0, %c0_i32 : i32, i32
  }
}

</mosaic_0001>

<bundles_post_ra>
// kernel: tpu_custom_call.1
= control target key start
LH: loop header
LB: loop body
LE: loop exit
PB: predicated region body
PF: predicated region fallthrough
CT: control target
= control target key end

     0   :  { %s3015_s18 = smov 0   ;;  %s4710_s0 = inlined_call_operand.vmem [shape: f32[128,3], index: 0, kind: input, shape index: {}]   ;;  %s4711_s1 = inlined_call_operand.vmem [shape: f32[128,3], index: 1, kind: input, shape index: {}]   ;;  %s4712_s2 = inlined_call_operand.vmem [shape: bf16[64,96], index: 2, kind: input, shape index: {}]   ;;  %s4713_s3 = inlined_call_operand.vmem [shape: bf16[5,32,64], index: 3, kind: input, shape index: {}]   ;;  %s4714_s4 = inlined_call_operand.vmem [shape: f32[8,64], index: 4, kind: input, shape index: {}]   ;;  %s4715_s5 = inlined_call_operand.vmem [shape: f32[128,4], index: 5, kind: output, shape index: {}]  }
   0x1 LB: > { %s2563_s19 = sadd.s32 4294967295, %s2962_s18   ;;  %p2567_p0 = scmp.ge.s32.totalorder %s2962_s18, 1  ;;  %s2962_s18 = sphi %s3015_s18, %s15_s18  }
   0x2   : > { %p199_p1 = scmp.lt.s32.totalorder %s2962_s18, 3 }
   0x4   : > { %p200_p2 = pnand %p2567_p0, %p199_p1 }
   0x6   : > { %203 = sbr.rel (%p200_p2) target bundleno = 1865 (0x749), region = 40 }
   0xb   : > { %s2568_s20 = sshll.u32 %s2563_s19, 3  ;;  %s2964_s25 = smov 3   ;;  %vm4738_vm0 = vcmask 23552   ;;  %vm558_vm1 = vcmask 48128   ;;  %vm567_vm2 = vcmask 97280   ;;  %vm576_vm3 = vcmask 146432  }
   0xc   : > { %p233_p3 = scmp.lt.s32.totalorder %s2568_s20, 15  ;;  %s2965_s29 = smov 6   ;;  %vm585_vm4 = vcmask 195584   ;;  %vm594_vm5 = vcmask 244736   ;;  %vm603_vm6 = vcmask 293888   ;;  %vm4739_vm7 = vcmask 343040  }
   0xd   : > { %s2966_s30 = smov 12   ;;  %s2967_s6 = smov 18   ;;  %vm621_vm8 = vcmask 392192   ;;  %vm630_vm9 = vcmask 441344   ;;  %vm639_vm10 = vcmask 490496  }
   0xe   : > { %s4861_s20 = smov (!%p233_p3, %s2568_s20), 15  ;;  %s2968_s7 = smov 24  }
   0xf   : > { %s3023_s21 = sshll.u32 %s4861_s20, 3  ;;  %s2969_s8 = smov 30  }
  0x10   : > { %s242_s24 = scalar_lea.vmem %s4711_s1, %s3023_s21  ;;  %s3033_s28 = scalar_lea.vmem %s4710_s0, %s3023_s21 }
  0x11   : > { %v261_v0 = vld [vmem:[%s242_s24] sm:$0xff]  ;;  %v263_v1 = vld [vmem:[%s242_s24 + $0x10] sm:$0xff]  ;;  %v262_v2 = vld [vmem:[%s242_s24 + $0x8] sm:$0xff]  ;;  %s2970_s9 = smov 36   ;;  %s2971_s10 = smov 42  }
  0x12   : > { %277 = vrot.lane.b32.xlu0 %v261_v0, %s2964_s25  ;;  %281 = vrot.lane.b32.xlu1 %v263_v1, %s2964_s25  ;;  %v264_v3 = vld [vmem:[%s242_s24 + $0x18] sm:$0xff]  ;;  %v265_v4 = vld [vmem:[%s242_s24 + $0x20] sm:$0xff]  ;;  %s2972_s11 = smov 48   ;;  %s2973_s12 = smov 54  }
  0x13   : > { %v266_v5 = vld [vmem:[%s242_s24 + $0x28] sm:$0xff]  ;;  %v267_v6 = vld [vmem:[%s242_s24 + $0x30] sm:$0xff]  ;;  %v268_v7 = vld [vmem:[%s242_s24 + $0x38] sm:$0xff]  ;;  %s2974_s13 = smov 60   ;;  %s2984_s23 = smov 99  }
  0x14   : > { %v253_v8 = vld [vmem:[%s3033_s28] sm:$0xff]  ;;  %v255_v11 = vld [vmem:[%s3033_s28 + $0x10] sm:$0xff]  ;;  %v254_v13 = vld [vmem:[%s3033_s28 + $0x8] sm:$0xff] }
  0x15   : > { %v256_v17 = vld [vmem:[%s3033_s28 + $0x18] sm:$0xff]  ;;  %v257_v21 = vld [vmem:[%s3033_s28 + $0x20] sm:$0xff]  ;;  %v258_v24 = vld [vmem:[%s3033_s28 + $0x28] sm:$0xff] }
  0x16   : > { %279 = vrot.lane.b32.xlu0 %v262_v2, %s2964_s25  ;;  %283 = vrot.lane.b32.xlu1 %v264_v3, %s2964_s25  ;;  %v259_v27 = vld [vmem:[%s3033_s28 + $0x30] sm:$0xff]  ;;  %v260_v30 = vld [vmem:[%s3033_s28 + $0x38] sm:$0xff] }
  0x1a   : > { %285 = vrot.lane.b32.xlu0 %v265_v4, %s2964_s25  ;;  %287 = vrot.lane.b32.xlu1 %v266_v5, %s2964_s25 }
  0x1e   : > { %289 = vrot.lane.b32.xlu0 %v267_v6, %s2964_s25  ;;  %291 = vrot.lane.b32.xlu1 %v268_v7, %s2964_s25 }
  0x84   : > { %v278_v9 = vpop.permute.xlu0 %277  ;;  %v282_v10 = vpop.permute.xlu1 %281 }
  0x85   : > { %v3038_v12 = vsel %vm4738_vm0, %v253_v8, %v278_v9  ;;  %v3044_v14 = vsel %vm4738_vm0, %v255_v11, %v282_v10 }
  0x86   : > { %318 = vrot.lane.b32.xlu0 %v3038_v12, %s2965_s29 }
  0x88   : > { %v280_v15 = vpop.permute.xlu0 %279  ;;  %v284_v16 = vpop.permute.xlu1 %283 }
  0x89   : > { %v3048_v18 = vsel %vm4738_vm0, %v254_v13, %v280_v15  ;;  %v3055_v19 = vsel %vm4738_vm0, %v256_v17, %v284_v16 }
  0x8a   : > { %320 = vrot.lane.b32.xlu1 %v3048_v18, %s2965_s29  ;;  %322 = vrot.lane.b32.xlu0 %v3044_v14, %s2965_s29 }
  0x8c   : > { %v286_v20 = vpop.permute.xlu0 %285  ;;  %v288_v23 = vpop.permute.xlu1 %287 }
  0x8d   : > { %v3111_v22 = vsel %vm4738_vm0, %v257_v21, %v286_v20  ;;  %v3119_v25 = vsel %vm4738_vm0, %v258_v24, %v288_v23 }
  0x8e   : > { %324 = vrot.lane.b32.xlu1 %v3055_v19, %s2965_s29  ;;  %342 = vrot.lane.b32.xlu0 %v3038_v12, %s2966_s30 }
  0x90   : > { %v290_v26 = vpop.permute.xlu0 %289  ;;  %v292_v29 = vpop.permute.xlu1 %291 }
  0x91   : > { %v3131_v28 = vsel %vm4738_vm0, %v259_v27, %v290_v26  ;;  %v3139_v31 = vsel %vm4738_vm0, %v260_v30, %v292_v29 }
  0x92   : > { %344 = vrot.lane.b32.xlu1 %v3048_v18, %s2966_s30  ;;  %346 = vrot.lane.b32.xlu0 %v3044_v14, %s2966_s30 }
  0x96   : > { %348 = vrot.lane.b32.xlu1 %v3055_v19, %s2966_s30  ;;  %366 = vrot.lane.b32.xlu0 %v3038_v12, %s2967_s6 }
  0x9a   : > { %368 = vrot.lane.b32.xlu1 %v3048_v18, %s2967_s6  ;;  %370 = vrot.lane.b32.xlu0 %v3044_v14, %s2967_s6 }
  0x9e   : > { %372 = vrot.lane.b32.xlu1 %v3055_v19, %s2967_s6  ;;  %390 = vrot.lane.b32.xlu0 %v3038_v12, %s2968_s7 }
  0xa2   : > { %392 = vrot.lane.b32.xlu1 %v3048_v18, %s2968_s7  ;;  %394 = vrot.lane.b32.xlu0 %v3044_v14, %s2968_s7 }
  0xa6   : > { %396 = vrot.lane.b32.xlu1 %v3055_v19, %s2968_s7  ;;  %414 = vrot.lane.b32.xlu0 %v3038_v12, %s2969_s8 }
  0xaa   : > { %416 = vrot.lane.b32.xlu1 %v3048_v18, %s2969_s8  ;;  %418 = vrot.lane.b32.xlu0 %v3044_v14, %s2969_s8 }
  0xae   : > { %420 = vrot.lane.b32.xlu1 %v3055_v19, %s2969_s8  ;;  %438 = vrot.lane.b32.xlu0 %v3038_v12, %s2970_s9 }
  0xb2   : > { %440 = vrot.lane.b32.xlu1 %v3048_v18, %s2970_s9  ;;  %442 = vrot.lane.b32.xlu0 %v3044_v14, %s2970_s9 }
  0xb6   : > { %444 = vrot.lane.b32.xlu1 %v3055_v19, %s2970_s9  ;;  %462 = vrot.lane.b32.xlu0 %v3038_v12, %s2971_s10 }
  0xba   : > { %464 = vrot.lane.b32.xlu1 %v3048_v18, %s2971_s10  ;;  %466 = vrot.lane.b32.xlu0 %v3044_v14, %s2971_s10 }
  0xbe   : > { %468 = vrot.lane.b32.xlu1 %v3055_v19, %s2971_s10  ;;  %486 = vrot.lane.b32.xlu0 %v3038_v12, %s2972_s11 }
  0xc2   : > { %488 = vrot.lane.b32.xlu1 %v3048_v18, %s2972_s11  ;;  %326 = vrot.lane.b32.xlu0 %v3111_v22, %s2965_s29 }
  0xc6   : > { %328 = vrot.lane.b32.xlu1 %v3119_v25, %s2965_s29  ;;  %490 = vrot.lane.b32.xlu0 %v3044_v14, %s2972_s11 }
  0xca   : > { %492 = vrot.lane.b32.xlu1 %v3055_v19, %s2972_s11  ;;  %510 = vrot.lane.b32.xlu0 %v3038_v12, %s2973_s12 }
  0xce   : > { %512 = vrot.lane.b32.xlu1 %v3048_v18, %s2973_s12  ;;  %330 = vrot.lane.b32.xlu0 %v3131_v28, %s2965_s29 }
  0xd2   : > { %332 = vrot.lane.b32.xlu1 %v3139_v31, %s2965_s29  ;;  %350 = vrot.lane.b32.xlu0 %v3111_v22, %s2966_s30 }
  0xd6   : > { %352 = vrot.lane.b32.xlu1 %v3119_v25, %s2966_s30  ;;  %514 = vrot.lane.b32.xlu0 %v3044_v14, %s2973_s12 }
  0xda   : > { %516 = vrot.lane.b32.xlu1 %v3055_v19, %s2973_s12  ;;  %534 = vrot.lane.b32.xlu0 %v3038_v12, %s2974_s13 }
  0xde   : > { %536 = vrot.lane.b32.xlu1 %v3048_v18, %s2974_s13  ;;  %354 = vrot.lane.b32.xlu0 %v3131_v28, %s2966_s30 }
  0xe2   : > { %356 = vrot.lane.b32.xlu1 %v3139_v31, %s2966_s30  ;;  %374 = vrot.lane.b32.xlu0 %v3111_v22, %s2967_s6  ;;  %s2982_s30 = smov 96  }
  0xe6   : > { %376 = vrot.lane.b32.xlu1 %v3119_v25, %s2967_s6  ;;  %538 = vrot.lane.b32.xlu0 %v3044_v14, %s2974_s13 }
  0xea   : > { %540 = vrot.lane.b32.xlu1 %v3055_v19, %s2974_s13  ;;  %378 = vrot.lane.b32.xlu0 %v3131_v28, %s2967_s6 }
  0xee   : > { %380 = vrot.lane.b32.xlu1 %v3139_v31, %s2967_s6  ;;  %398 = vrot.lane.b32.xlu0 %v3111_v22, %s2968_s7  ;;  %s2983_s6 = smov 64  }
  0xf2   : > { %400 = vrot.lane.b32.xlu1 %v3119_v25, %s2968_s7  ;;  %402 = vrot.lane.b32.xlu0 %v3131_v28, %s2968_s7 }
  0xf6   : > { %404 = vrot.lane.b32.xlu1 %v3139_v31, %s2968_s7  ;;  %422 = vrot.lane.b32.xlu0 %v3111_v22, %s2969_s8 }
  0xf8   : > { %v319_v32 = vpop.permute.xlu0 %318 }
  0xf9   : > { %v559_v46 = vsel %vm558_vm1, %v3038_v12, %v319_v32 }
  0xfa   : > { %424 = vrot.lane.b32.xlu1 %v3119_v25, %s2969_s8  ;;  %426 = vrot.lane.b32.xlu0 %v3131_v28, %s2969_s8 }
  0xfc   : > { %v321_v33 = vpop.permute.xlu1 %320  ;;  %v323_v34 = vpop.permute.xlu0 %322 }
  0xfd   : > { %v561_v41 = vsel %vm558_vm1, %v3044_v14, %v323_v34  ;;  %v560_v55 = vsel %vm558_vm1, %v3048_v18, %v321_v33 }
  0xfe   : > { %428 = vrot.lane.b32.xlu1 %v3139_v31, %s2969_s8  ;;  %446 = vrot.lane.b32.xlu0 %v3111_v22, %s2970_s9 }
 0x100   : > { %v325_v35 = vpop.permute.xlu1 %324  ;;  %v343_v36 = vpop.permute.xlu0 %342 }
 0x101   : > { %v562_v47 = vsel %vm558_vm1, %v3055_v19, %v325_v35  ;;  %v568_v48 = vsel %vm567_vm2, %v559_v46, %v343_v36 }
 0x102   : > { %448 = vrot.lane.b32.xlu1 %v3119_v25, %s2970_s9  ;;  %450 = vrot.lane.b32.xlu0 %v3131_v28, %s2970_s9 }
 0x104   : > { %v345_v37 = vpop.permute.xlu1 %344  ;;  %v347_v38 = vpop.permute.xlu0 %346 }
 0x105   : > { %v570_v42 = vsel %vm567_vm2, %v561_v41, %v347_v38  ;;  %v569_v56 = vsel %vm567_vm2, %v560_v55, %v345_v37 }
 0x106   : > { %452 = vrot.lane.b32.xlu1 %v3139_v31, %s2970_s9  ;;  %470 = vrot.lane.b32.xlu0 %v3111_v22, %s2971_s10 }
 0x108   : > { %v349_v39 = vpop.permute.xlu1 %348  ;;  %v367_v40 = vpop.permute.xlu0 %366 }
 0x109   : > { %v571_v49 = vsel %vm567_vm2, %v562_v47, %v349_v39  ;;  %v577_v50 = vsel %vm576_vm3, %v568_v48, %v367_v40 }
 0x10a   : > { %472 = vrot.lane.b32.xlu1 %v3119_v25, %s2971_s10  ;;  %474 = vrot.lane.b32.xlu0 %v3131_v28, %s2971_s10 }
 0x10c   : > { %v369_v43 = vpop.permute.xlu1 %368  ;;  %v371_v44 = vpop.permute.xlu0 %370 }
 0x10d   : > { %v579_v45 = vsel %vm576_vm3, %v570_v42, %v371_v44  ;;  %v578_v57 = vsel %vm576_vm3, %v569_v56, %v369_v43 }
 0x10e   : > { %476 = vrot.lane.b32.xlu1 %v3139_v31, %s2971_s10  ;;  %494 = vrot.lane.b32.xlu0 %v3111_v22, %s2972_s11 }
 0x110   : > { %v373_v51 = vpop.permute.xlu1 %372  ;;  %v391_v52 = vpop.permute.xlu0 %390 }
 0x111   : > { %v580_v53 = vsel %vm576_vm3, %v571_v49, %v373_v51  ;;  %v586_v54 = vsel %vm585_vm4, %v577_v50, %v391_v52 }
 0x112   : > { %496 = vrot.lane.b32.xlu1 %v3119_v25, %s2972_s11  ;;  %498 = vrot.lane.b32.xlu0 %v3131_v28, %s2972_s11 }
 0x114   : > { %v393_v58 = vpop.permute.xlu1 %392  ;;  %v395_v59 = vpop.permute.xlu0 %394 }
 0x115   : > { %v587_v60 = vsel %vm585_vm4, %v578_v57, %v393_v58  ;;  %v588_v61 = vsel %vm585_vm4, %v579_v45, %v395_v59 }
 0x116   : > { %500 = vrot.lane.b32.xlu1 %v3139_v31, %s2972_s11  ;;  %518 = vrot.lane.b32.xlu0 %v3111_v22, %s2973_s12 }
 0x118   : > { %v397_v62 = vpop.permute.xlu1 %396  ;;  %v415_v63 = vpop.permute.xlu0 %414 }
 0x119   : > { %v589_v0 = vsel %vm585_vm4, %v580_v53, %v397_v62  ;;  %v595_v1 = vsel %vm594_vm5, %v586_v54, %v415_v63  ;;  %v648_v53 = vlaneseq  ;;  %v3299_v62 = vld [vmem:[%s4714_s4] sm:$0xff] }
 0x11a   : > { %520 = vrot.lane.b32.xlu1 %v3119_v25, %s2973_s12  ;;  %522 = vrot.lane.b32.xlu0 %v3131_v28, %s2973_s12 }
 0x11b   : > { %v3284_v56 = vshrl.u32 %v648_v53, 7 }
 0x11c   : > { %v417_v2 = vpop.permute.xlu1 %416  ;;  %v419_v3 = vpop.permute.xlu0 %418 }
 0x11d   : > { %v596_v4 = vsel %vm594_vm5, %v587_v60, %v417_v2  ;;  %v597_v5 = vsel %vm594_vm5, %v588_v61, %v419_v3  ;;  %4765 = vst [vmem:[#allocation3_spill] sm:$0xff] %v3284_v56  ;;  %v650_v59 = vsub.s32 0, %v3284_v56  ;;  %v662_v63 = vsub.s32 1, %v3284_v56 }
 0x11e   : > { %524 = vrot.lane.b32.xlu1 %v3139_v31, %s2973_s12  ;;  %542 = vrot.lane.b32.xlu0 %v3111_v22, %s2974_s13 }
 0x120   : > { %v421_v6 = vpop.permute.xlu1 %420  ;;  %v439_v7 = vpop.permute.xlu0 %438 }
 0x121   : > { %v598_v8 = vsel %vm594_vm5, %v589_v0, %v421_v6  ;;  %v604_v9 = vsel %vm603_vm6, %v595_v1, %v439_v7  ;;  %v3303_v0 = vrot.slane %v3299_v62, %v650_v59  ;;  %v4722_v59 = vmov 2131351028  }
 0x122   : > { %544 = vrot.lane.b32.xlu1 %v3119_v25, %s2974_s13  ;;  %546 = vrot.lane.b32.xlu0 %v3131_v28, %s2974_s13 }
 0x124   : > { %v441_v10 = vpop.permute.xlu1 %440  ;;  %v443_v11 = vpop.permute.xlu0 %442 }
 0x125   : > { %v605_v12 = vsel %vm603_vm6, %v596_v4, %v441_v10  ;;  %v606_v13 = vsel %vm603_vm6, %v597_v5, %v443_v11  ;;  %v3311_v4 = vrot.slane %v3299_v62, %v662_v63 }
 0x126   : > { %548 = vrot.lane.b32.xlu1 %v3139_v31, %s2974_s13 }
 0x128   : > { %v445_v14 = vpop.permute.xlu1 %444  ;;  %v463_v15 = vpop.permute.xlu0 %462 }
 0x129   : > { %v607_v16 = vsel %vm603_vm6, %v598_v8, %v445_v14  ;;  %v613_v17 = vsel %vm4739_vm7, %v604_v9, %v463_v15 }
 0x12c   : > { %v465_v18 = vpop.permute.xlu1 %464  ;;  %v467_v19 = vpop.permute.xlu0 %466 }
 0x12d   : > { %v614_v20 = vsel %vm4739_vm7, %v605_v12, %v465_v18  ;;  %v615_v21 = vsel %vm4739_vm7, %v606_v13, %v467_v19 }
 0x130   : > { %v469_v23 = vpop.permute.xlu1 %468  ;;  %v487_v24 = vpop.permute.xlu0 %486 }
 0x131   : > { %v616_v26 = vsel %vm4739_vm7, %v607_v16, %v469_v23  ;;  %v622_v27 = vsel %vm621_vm8, %v613_v17, %v487_v24 }
 0x134   : > { %v489_v29 = vpop.permute.xlu1 %488  ;;  %v327_v30 = vpop.permute.xlu0 %326 }
 0x135   : > { %v623_v32 = vsel %vm621_vm8, %v614_v20, %v489_v29  ;;  %v563_v43 = vsel %vm558_vm1, %v3111_v22, %v327_v30 }
 0x138   : > { %v329_v33 = vpop.permute.xlu1 %328  ;;  %v491_v34 = vpop.permute.xlu0 %490 }
 0x139   : > { %v624_v35 = vsel %vm621_vm8, %v615_v21, %v491_v34  ;;  %v564_v47 = vsel %vm558_vm1, %v3119_v25, %v329_v33  ;;  %v2846_v34 = vld [vmem:[%s4712_s2 + $0x10] sm:$0xff]  }
 0x13c   : > { %v493_v36 = vpop.permute.xlu1 %492  ;;  %v511_v37 = vpop.permute.xlu0 %510 }
 0x13d   : > { %v625_v38 = vsel %vm621_vm8, %v616_v26, %v493_v36  ;;  %v631_v39 = vsel %vm630_vm9, %v622_v27, %v511_v37  ;;  %v2845_v27 = vld [vmem:[%s4712_s2 + $0x18] sm:$0xff]  }
 0x13e   : > { %2708 = vmatprep.subr.bf16.mxu0 %v2845_v27 }
 0x13f   : > { %2709 = vmatpush3.bf16.msra.mxu0 %v2845_v27 }
 0x140   : > { %v513_v40 = vpop.permute.xlu1 %512  ;;  %v3264_v41 = vpop.permute.xlu0 %330  ;;  %2710 = vmatprep.subr.bf16.mxu0 %v2846_v34 }
 0x141   : > { %v632_v42 = vsel %vm630_vm9, %v623_v32, %v513_v40 }
 0x143   : > { %2711 = vmatpush3.bf16.msra.mxu0 %v2846_v34 }
 0x144   : > { %v3269_v44 = vpop.permute.xlu1 %332  ;;  %v351_v45 = vpop.permute.xlu0 %350 }
 0x145   : > { %v3272_v46 = vsel %vm567_vm2, %v563_v43, %v351_v45  ;;  %v4718_v45 = vmov 1326507024  }
 0x148   : > { %v353_v48 = vpop.permute.xlu1 %352  ;;  %v515_v49 = vpop.permute.xlu0 %514 }
 0x149   : > { %v3277_v50 = vsel %vm567_vm2, %v564_v47, %v353_v48  ;;  %v633_v51 = vsel %vm630_vm9, %v624_v35, %v515_v49 }
 0x14c   : > { %v517_v52 = vpop.permute.xlu1 %516  ;;  %v535_v22 = vpop.permute.xlu0 %534 }
 0x14d   : > { %v634_v54 = vsel %vm630_vm9, %v625_v38, %v517_v52  ;;  %v3282_v55 = vsel %vm639_vm10, %v631_v39, %v535_v22 }
 0x14e   : > { %4764 = vst [vmem:[#allocation2_spill] sm:$0xff] %v3282_v55 }
 0x150   : > { %v537_v57 = vpop.permute.xlu1 %536  ;;  %v3286_v25 = vpop.permute.xlu0 %354 }
 0x151   : > { %v3289_v58 = vsel %vm639_vm10, %v632_v42, %v537_v57 }
 0x152   : > { %4766 = vst [vmem:[#allocation4_spill] sm:$0xff] %v3289_v58 }
 0x154   : > { %v3292_v60 = vpop.permute.xlu1 %356  ;;  %v3294_v61 = vpop.permute.xlu0 %374 }
 0x158   : > { %v3305_v1 = vpop.permute.xlu1 %376  ;;  %v539_v2 = vpop.permute.xlu0 %538 }
 0x159   : > { %v3308_v3 = vsel %vm639_vm10, %v633_v51, %v539_v2  ;;  %v4720_v51 = vmov 920167782   ;;  %v4716_v2 = vmov 2102212464  }
 0x15a   : > { %4767 = vst [vmem:[#allocation5_spill] sm:$0xff] %v3308_v3  ;;  %v654_v5 = vmul.f32 %v3303_v0, %v3308_v3  ;;  %v565_v3 = vsel %vm558_vm1, %v3131_v28, %v3264_v41 }
 0x15c   : > { %v3316_v6 = vadd.f32 %v3311_v4, %v654_v5  ;;  %v541_v7 = vpop.permute.xlu1 %540  ;;  %v3318_v8 = vpop.permute.xlu0 %378 }
 0x15d   : > { %v3334_v19 = vsel %vm639_vm10, %v634_v54, %v541_v7 }
 0x15e   : > { %4768 = vst [vmem:[#allocation6_spill] sm:$0xff] %v3316_v6  ;;  %v883_v9 = vand.u32 2139095040, %v3316_v6  ;;  %4769 = vst [vmem:[#allocation7_spill] sm:$0xff] %v3334_v19  ;;  %v655_v23 = vmul.f32 %v3303_v0, %v3334_v19  ;;  %v4726_v49 = vand.u32 2147483647, %v3316_v6 }
 0x160   : > { %v3321_v10 = vpop.permute.xlu1 %380  ;;  %v3323_v11 = vpop.permute.xlu0 %398  ;;  %v884_v12 = vshrl.u32 %v883_v9, 23  ;;  %v3350_v30 = vadd.f32 %v3311_v4, %v655_v23  ;;  %v887_v34 = vand.u32 8388607, %v4726_v49 }
 0x162   : > { %v2582_v15 = vadd.s32 4294967169, %v884_v12  ;;  %4770 = vst [vmem:[#allocation8_spill] sm:$0xff] %v3350_v30  ;;  %v987_v36 = vand.u32 2139095040, %v3350_v30  ;;  %v4724_v12 = vmov 2475754826  }
 0x164   : > { %v3325_v13 = vpop.permute.xlu1 %400  ;;  %v3327_v14 = vpop.permute.xlu0 %402  ;;  %v890_v18 = vadd.s32 1, %v2582_v15  ;;  %v988_v40 = vshrl.u32 %v987_v36, 23 }
 0x166   : > { %vm891_vm11 = vcmp.gt.s32.totalorder %v890_v18, 0  ;;  %v2586_v48 = vadd.s32 4294967169, %v988_v40 }
 0x167   : > { %v892_v29 = vsel %vm891_vm11, %v890_v18, 0 }
 0x168   : > { %v3329_v16 = vpop.permute.xlu1 %404  ;;  %v3331_v17 = vpop.permute.xlu0 %422  ;;  %v894_v35 = vand.u32 31, %v892_v29  ;;  %v3378_v57 = vshrl.u32 %v892_v29, 5  ;;  %v994_v27 = vadd.s32 1, %v2586_v48  ;;  %v652_v29 = vmul.f32 %v3303_v0, %v3282_v55 }
 0x16a   : > { %v3364_v39 = vsub.s32 32, %v894_v35  ;;  %v909_v53 = vshll.u32 %v4720_v51, %v894_v35  ;;  %v906_v7 = vshll.u32 %v4716_v2, %v894_v35  ;;  %v900_v18 = vshll.u32 %v4724_v12, %v894_v35 }
 0x16b   : > { %v903_v23 = vshll.u32 %v4722_v59, %v894_v35  ;;  %vm915_vm12 = vcmp.lt.s32.totalorder %v3378_v57, 4  ;;  %vm995_vm13 = vcmp.gt.s32.totalorder %v994_v27, 0  ;;  %vm912_vm14 = vcmp.lt.s32.totalorder %v3378_v57, 1 }
 0x16c   : > { %v3336_v20 = vpop.permute.xlu1 %424  ;;  %v3338_v21 = vpop.permute.xlu0 %426  ;;  %v910_v47 = vshrl.u32 %v4718_v45, %v3364_v39  ;;  %v907_v52 = vshrl.u32 %v4720_v51, %v3364_v39  ;;  %v901_v63 = vshrl.u32 %v4722_v59, %v3364_v39  ;;  %v904_v5 = vshrl.u32 %v4716_v2, %v3364_v39 }
 0x16d   : > { %v898_v15 = vshrl.u32 %v4724_v12, %v3364_v39  ;;  %v3402_v12 = vadd.f32 %v3311_v4, %v652_v29  ;;  %vm914_vm15 = vcmp.lt.s32.totalorder %v3378_v57, 3  ;;  %vm913_vm11 = vcmp.lt.s32.totalorder %v3378_v57, 2 }
 0x16e   : > { %v911_v9 = vor.u32 %v910_v47, %v909_v53  ;;  %v908_v36 = vor.u32 %v907_v52, %v906_v7  ;;  %v4727_v47 = vmov 683565275   ;;  %v902_v45 = vor.u32 %v901_v63, %v900_v18 }
 0x16f   : > { %v897_v53 = vshll.u32 %v4727_v47, %v894_v35  ;;  %v905_v51 = vor.u32 %v904_v5, %v903_v23  ;;  %4771 = vst [vmem:[#allocation9_spill] sm:$0xff] %v3402_v12  ;;  %v888_v5 = vor.u32 8388608, %v887_v34  ;;  %v581_v18 = vsel %vm576_vm3, %v3272_v46, %v3294_v61 }
 0x170   : > { %v3342_v24 = vpop.permute.xlu1 %428  ;;  %v3344_v26 = vpop.permute.xlu0 %446  ;;  %v925_v48 = vsel %vm915_vm12, %v911_v9, 1326507024  ;;  %v921_v52 = vsel %vm915_vm12, %v908_v36, 920167782  ;;  %v675_v34 = vand.u32 2139095040, %v3402_v12 }
 0x171   : > { %v899_v59 = vor.u32 %v898_v15, %v897_v53  ;;  %v924_v7 = vsel %vm912_vm14, %v902_v45, %v905_v51  ;;  %v926_v9 = vsel %vm914_vm15, %v908_v36, %v925_v48  ;;  %v996_v15 = vsel %vm995_vm13, %v994_v27, 0 }
 0x172   : > { %v922_v29 = vsel %vm914_vm15, %v905_v51, %v921_v52  ;;  %v653_v53 = vmul.f32 %v3303_v0, %v3289_v58  ;;  %v927_v27 = vsel %vm913_vm11, %v924_v7, %v926_v9  ;;  %v590_v36 = vsel %vm585_vm4, %v581_v18, %v3323_v11 }
 0x173   : > { %v920_v23 = vsel %vm912_vm14, %v899_v59, %v902_v45  ;;  %v3431_v48 = vshll.u32 %v888_v5, 8  ;;  %v998_v49 = vand.u32 31, %v996_v15  ;;  %v599_v52 = vsel %vm594_vm5, %v590_v36, %v3331_v17 }
 0x174   : > { %v3352_v32 = vpop.permute.xlu1 %448  ;;  %v3354_v33 = vpop.permute.xlu0 %450  ;;  %v923_v47 = vsel %vm913_vm11, %v920_v23, %v922_v29  ;;  %v608_v58 = vsel %vm603_vm6, %v599_v52, %v3344_v26  ;;  %v582_v7 = vsel %vm576_vm3, %v3277_v50, %v3305_v1  ;;  %v676_v18 = vshrl.u32 %v675_v34, 23 }
 0x175   : > { %v3443_v11 = vmul.u32.u64.low %v3431_v48, %v927_v27  ;;  %v3444_v9 = vmul.u32.u64.high %v3431_v48, %v927_v27, %v3443_v11  ;;  %v3449_v17 = vadd.f32 %v3311_v4, %v653_v53  ;;  %v591_v23 = vsel %vm585_vm4, %v582_v7, %v3325_v13 }
 0x176   : > { %v3457_v50 = vmul.u32.u64.low %v3431_v48, %v923_v47  ;;  %v3458_v1 = vmul.u32.u64.high %v3431_v48, %v923_v47, %v3457_v50  ;;  %v3461_v27 = vsub.s32 32, %v998_v49  ;;  %v4777_v13 = vmov 683565275  }
 0x177   : > { %4773 = vst [vmem:[#allocation11_spill] sm:$0xff] %v3449_v17  ;;  %v917_v53 = vsel %vm915_vm12, %v905_v51, 2102212464  ;;  %v2574_v52 = vadd.s32 4294967169, %v676_v18  ;;  %v779_v7 = vand.u32 2139095040, %v3449_v17 }
 0x178   : > { %v3360_v37 = vpop.permute.xlu1 %452  ;;  %v3362_v38 = vpop.permute.xlu0 %470  ;;  %4775 = vst [vmem:[#allocation13_spill] sm:$0xff] %v3457_v50  ;;  %v4778_v51 = vmov 920167782   ;;  %v918_v18 = vsel %vm914_vm15, %v902_v45, %v917_v53  ;;  %vm937_vm12 = vc.u32 %v3444_v9, %v3457_v50  ;;  %v4783_v45 = vmov 2475754826  }
 0x179   : > { %v617_v5 = vsel %vm4739_vm7, %v608_v58, %v3362_v38  ;;  %v600_v38 = vsel %vm594_vm5, %v591_v23, %v3336_v20  ;;  %v1011_v23 = vshrl.u32 %v4778_v51, %v3461_v27  ;;  %v1002_v53 = vshrl.u32 %v4783_v45, %v3461_v27 }
 0x17a   : > { %v609_v47 = vsel %vm603_vm6, %v600_v38, %v3352_v32  ;;  %v4781_v38 = vmov 2102212464   ;;  %v682_v17 = vadd.s32 1, %v2574_v52  ;;  %v574_v52 = vsel %vm567_vm2, %v565_v3, %v3286_v25 }
 0x17c   : > { %v3366_v42 = vpop.permute.xlu1 %472  ;;  %v3368_v43 = vpop.permute.xlu0 %474 }
 0x180   : > { %v3376_v22 = vpop.permute.xlu1 %476  ;;  %v495_v54 = vpop.permute.xlu0 %494 }
 0x181   : > { %v626_v26 = vsel %vm621_vm8, %v617_v5, %v495_v54  ;;  %v896_v54 = vshrl.u32 %v4777_v13, %v3364_v39 }
 0x183   : > { %v916_v5 = vsel %vm912_vm14, %v896_v54, %v899_v59  ;;  %v3497_v59 = vshrl.u32 %v996_v15, 5  ;;  %v1010_v54 = vshll.u32 %v4781_v38, %v998_v49  ;;  %v1001_v15 = vshll.u32 %v4777_v13, %v998_v49 }
 0x184   : > { %v3393_v40 = vpop.permute.xlu1 %496  ;;  %v3395_v2 = vpop.permute.xlu0 %498  ;;  %v919_v6 = vsel %vm913_vm11, %v916_v5, %v918_v18  ;;  %vm683_vm14 = vcmp.gt.s32.totalorder %v682_v17, 0 }
 0x185   : > { %v1012_v39 = vor.u32 %v1011_v23, %v1010_v54  ;;  %v4785_v23 = vand.u32 2147483647, %v3350_v30  ;;  %vm1019_vm13 = vcmp.lt.s32.totalorder %v3497_v59, 4  ;;  %v935_v5 = vmul.u32 %v3431_v48, %v919_v6 }
 0x186   : > { %vm1016_vm15 = vcmp.lt.s32.totalorder %v3497_v59, 1  ;;  %vm1018_vm11 = vcmp.lt.s32.totalorder %v3497_v59, 3 }
 0x187   : > { %v991_v54 = vand.u32 8388607, %v4785_v23  ;;  %v1025_v41 = vsel %vm1019_vm13, %v1012_v39, 920167782 }
 0x188   : > { %v3408_v35 = vpop.permute.xlu1 %500  ;;  %v519_v63 = vpop.permute.xlu0 %518 }
 0x189   : > { %4772 = vst [vmem:[#allocation10_spill] sm:$0xff] %v3408_v35  ;;  %v635_v58 = vsel %vm630_vm9, %v626_v26, %v519_v63  ;;  %v618_v63 = vsel %vm4739_vm7, %v609_v47, %v3366_v42  ;;  %v4779_v42 = vmov 1326507024   ;;  %v4784_v47 = vmov 2131351028  }
 0x18a   : > { %v627_v32 = vsel %vm621_vm8, %v618_v63, %v3393_v40  ;;  %v1014_v26 = vshrl.u32 %v4779_v42, %v3461_v27  ;;  %v1005_v63 = vshrl.u32 %v4784_v47, %v3461_v27 }
 0x18c   : > { %v521_v46 = vpop.permute.xlu1 %520  ;;  %v3429_v61 = vpop.permute.xlu0 %522 }
 0x190   : > { %v3454_v29 = vpop.permute.xlu1 %524  ;;  %v543_v36 = vpop.permute.xlu0 %542 }
 0x191   : > { %4774 = vst [vmem:[#allocation12_spill] sm:$0xff] %v3454_v29  ;;  %v3467_v34 = vsel %vm639_vm10, %v635_v58, %v543_v36  ;;  %v636_v36 = vsel %vm630_vm9, %v627_v32, %v521_v46  ;;  %v1008_v46 = vshrl.u32 %v4781_v38, %v3461_v27  ;;  %v938_v32 = vadd.s32 1, %v3458_v1 }
 0x192   : > { %4776 = vst [vmem:[#allocation14_spill] sm:$0xff] %v3467_v34  ;;  %v656_v20 = vmul.f32 %v3303_v0, %v3467_v34  ;;  %v3524_v29 = vor.u32 %v1002_v53, %v1001_v15 }
 0x193   : > { %v939_v28 = vsel %vm937_vm12, %v938_v32, %v3458_v1  ;;  %v4741_v1 = vand.u32 2147483647, %v3402_v12  ;;  %vm1017_vm12 = vcmp.lt.s32.totalorder %v3497_v59, 2 }
 0x194   : > { %v545_v11 = vpop.permute.xlu1 %544  ;;  %v3493_v58 = vadd.f32 %v3311_v4, %v656_v20  ;;  %v1013_v20 = vshll.u32 %v4778_v51, %v998_v49 }
 0x195   : > { %v3501_v40 = vsel %vm639_vm10, %v636_v36, %v545_v11  ;;  %v1004_v11 = vshll.u32 %v4783_v45, %v998_v49  ;;  %v1007_v36 = vshll.u32 %v4784_v47, %v998_v49 }
 0x196   : > { %4780 = vst [vmem:[#allocation15_spill] sm:$0xff] %v3493_v58  ;;  %4782 = vst [vmem:[#allocation16_spill] sm:$0xff] %v3501_v40  ;;  %v1091_v55 = vand.u32 2139095040, %v3493_v58  ;;  %v1015_v34 = vor.u32 %v1014_v26, %v1013_v20  ;;  %v657_v19 = vmul.f32 %v3303_v0, %v3501_v40  ;;  %v780_v26 = vshrl.u32 %v779_v7, 23 }
 0x197   : > { %v3526_v35 = vor.u32 %v1005_v63, %v1004_v11  ;;  %v1009_v49 = vor.u32 %v1008_v46, %v1007_v36  ;;  %v3546_v7 = vadd.s32 %v939_v28, %v935_v5  ;;  %v684_v63 = vsel %vm683_vm14, %v682_v17, 0  ;;  %v547_v5 = vpop.permute.xlu0 %546 }
 0x198   : > { %v1092_v57 = vshrl.u32 %v1091_v55, 23  ;;  %v1029_v18 = vsel %vm1019_vm13, %v1015_v34, 1326507024  ;;  %v3541_v53 = vadd.f32 %v3311_v4, %v657_v19  ;;  %v992_v55 = vor.u32 8388608, %v991_v54 }
 0x199   : > { %v1024_v25 = vsel %vm1016_vm15, %v3524_v29, %v3526_v35  ;;  %v1026_v3 = vsel %vm1018_vm11, %v1009_v49, %v1025_v41  ;;  %v2578_v6 = vadd.s32 4294967169, %v780_v26  ;;  %v1028_v19 = vsel %vm1016_vm15, %v3526_v35, %v1009_v49 }
 0x19a   : > { %4786 = vst [vmem:[#allocation17_spill] sm:$0xff] %v3541_v53  ;;  %v1030_v48 = vsel %vm1018_vm11, %v1012_v39, %v1029_v18  ;;  %v2590_v34 = vadd.s32 4294967169, %v1092_v57  ;;  %v583_v46 = vsel %vm576_vm3, %v574_v52, %v3318_v8  ;;  %v1195_v20 = vand.u32 2139095040, %v3541_v53 }
 0x19b   : > { %v1027_v32 = vsel %vm1017_vm12, %v1024_v25, %v1026_v3  ;;  %v592_v15 = vsel %vm585_vm4, %v583_v46, %v3327_v14  ;;  %v679_v11 = vand.u32 8388607, %v4741_v1  ;;  %v941_v39 = vadd.s32 536870912, %v3546_v7 }
 0x19c   : > { %v1031_v17 = vsel %vm1017_vm12, %v1028_v19, %v1030_v48  ;;  %v3572_v36 = vshll.u32 %v992_v55, 8  ;;  %v601_v8 = vsel %vm594_vm5, %v592_v15, %v3338_v21  ;;  %v3576_v23 = vand.u32 31, %v684_v63 }
 0x19d   : > { %v786_v54 = vadd.s32 1, %v2578_v6  ;;  %v610_v26 = vsel %vm603_vm6, %v601_v8, %v3354_v33  ;;  %v1098_v14 = vadd.s32 1, %v2590_v34  ;;  %v1196_v52 = vshrl.u32 %v1195_v20, 23 }
 0x19e   : > { %v3581_v28 = vmul.u32.u64.low %v3572_v36, %v1027_v32  ;;  %v3582_v41 = vmul.u32.u64.high %v3572_v36, %v1027_v32, %v3581_v28  ;;  %v619_v57 = vsel %vm4739_vm7, %v610_v26, %v3368_v43  ;;  %vm252_vm14 = vcmp.gt.f32.partialorder %v3299_v62, 0.5 }
 0x19f   : > { %v3588_v18 = vmul.u32.u64.low %v3572_v36, %v1031_v17  ;;  %v3589_v21 = vmul.u32.u64.high %v3572_v36, %v1031_v17, %v3588_v18  ;;  %v628_v55 = vsel %vm621_vm8, %v619_v57, %v3395_v2  ;;  %v3594_v33 = vshrl.u32 %v941_v39, 30 }
 0x1a0   : > { %4787 = vst [vmem:[#allocation18_spill] sm:$0xff] %v3581_v28  ;;  %v637_v25 = vsel %vm630_vm9, %v628_v55, %v3429_v61  ;;  %vm1099_vm0 = vcmp.gt.s32.totalorder %v1098_v14, 0  ;;  %v680_v43 = vor.u32 8388608, %v679_v11  ;;  %v3602_v6 = vsub.s32 32, %v3576_v23 }
 0x1a1   : > { %4788 = vst [vmem:[#allocation19_spill] sm:$0xff] %v3589_v21  ;;  %4789 = vst [vmem:[#allocation20_spill] sm:$0xff] %v3594_v33  ;;  %v3599_v3 = vsel %vm639_vm10, %v637_v25, %v547_v5  ;;  %vm787_vm7 = vcmp.gt.s32.totalorder %v786_v54, 0  ;;  %v1021_v19 = vsel %vm1019_vm13, %v1009_v49, 2102212464  ;;  %v2594_v2 = vadd.s32 4294967169, %v1196_v52 }
 0x1a2   : > { %4790 = vst [vmem:[#allocation21_spill] sm:$0xff] %v3599_v3  ;;  %v566_v62 = vsel %vm558_vm1, %v3139_v31, %v3269_v44  ;;  %v2981_v48 = vmov 0   ;;  %v1000_v46 = vshrl.u32 %v4777_v13, %v3461_v27  ;;  %v943_v32 = vshll.u32 %v3594_v33, 30 }
 0x1a3   : > { %v3609_v34 = vsel %vm252_vm14, 1, %v2981_v48  ;;  %v575_v20 = vsel %vm567_vm2, %v566_v62, %v3292_v60  ;;  %v1100_v49 = vsel %vm1099_vm0, %v1098_v14, 0  ;;  %v658_v15 = vmul.f32 %v3303_v0, %v3599_v3 }
 0x1a4   : > { %4791 = vst [vmem:[#allocation22_spill] sm:$0xff] %v3609_v34  ;;  %v788_v11 = vsel %vm787_vm7, %v786_v54, 0  ;;  %v1020_v31 = vsel %vm1016_vm15, %v1000_v46, %v3524_v29  ;;  %v1022_v44 = vsel %vm1018_vm11, %v3526_v35, %v1021_v19  ;;  %v3626_v27 = vshll.u32 %v680_v43, 8 }
 0x1a5   : > { %v699_v60 = vshrl.u32 %v4778_v51, %v3602_v6  ;;  %v3632_v39 = vshrl.u32 %v4779_v42, %v3602_v6  ;;  %v1042_v17 = vadd.s32 1, %v3582_v41  ;;  %v1202_v8 = vadd.s32 1, %v2594_v2 }
 0x1a6   : > { %4792 = vst [vmem:[#allocation23_spill] sm:$0xff] %v3626_v27  ;;  %v698_v54 = vshll.u32 %v4781_v38, %v3576_v23  ;;  %v3639_v29 = vshll.u32 %v4778_v51, %v3576_v23  ;;  %vm1041_vm0 = vc.u32 %v3589_v21, %v3581_v28  ;;  %v1102_v35 = vand.u32 31, %v1100_v49 }
 0x1a7   : > { %v3643_v26 = vand.u32 31, %v788_v11  ;;  %v3646_v14 = vsub.s32 %v3546_v7, %v943_v32  ;;  %v1023_v57 = vsel %vm1017_vm12, %v1020_v31, %v1022_v44  ;;  %v3651_v52 = vadd.f32 %v3311_v4, %v658_v15 }
 0x1a8   : > { %v3653_v5 = vshrl.u32 %v684_v63, 5  ;;  %v3655_v18 = vshrl.u32 %v788_v11, 5  ;;  %v4740_v55 = vand.u32 2147483647, %v3493_v58  ;;  %v4742_v25 = vand.u32 2147483647, %v3541_v53 }
 0x1a9   : > { %v3659_v43 = vor.u32 %v699_v60, %v698_v54  ;;  %v1043_v19 = vsel %vm1041_vm0, %v1042_v17, %v3582_v41  ;;  %vm1203_vm1 = vcmp.gt.s32.totalorder %v1202_v8, 0  ;;  %v1039_v59 = vmul.u32 %v3572_v36, %v1023_v57 }
 0x1aa   : > { %4793 = vst [vmem:[#allocation24_spill] sm:$0xff] %v3655_v18  ;;  %v584_v63 = vsel %vm576_vm3, %v575_v20, %v3321_v10  ;;  %v3667_v2 = vsub.s32 32, %v1102_v35  ;;  %v1204_v62 = vsel %vm1203_vm1, %v1202_v8, 0  ;;  %v3670_v48 = vsub.s32 32, %v3643_v26 }
 0x1ab   : > { %v3675_v32 = vsel %vm585_vm4, %v584_v63, %v3329_v16  ;;  %v1299_v41 = vand.u32 2139095040, %v3651_v52  ;;  %v3678_v15 = vadd.s32 %v1043_v19, %v1039_v59  ;;  %v3682_v36 = vand.u32 8388607, %v4740_v55 }
 0x1ac   : > { %v3686_v10 = vand.u32 8388607, %v4742_v25  ;;  %v1206_v20 = vand.u32 31, %v1204_v62  ;;  %v3688_v11 = vshrl.u32 %v1100_v49, 5  ;;  %v1105_v31 = vshll.u32 %v4777_v13, %v1102_v35 }
 0x1ad   : > { %v1108_v16 = vshll.u32 %v4783_v45, %v1102_v35  ;;  %v1111_v44 = vshll.u32 %v4784_v47, %v1102_v35  ;;  %v1106_v60 = vshrl.u32 %v4783_v45, %v3667_v2  ;;  %v1114_v17 = vshll.u32 %v4781_v38, %v1102_v35 }
 0x1ae   : > { %v1117_v8 = vshll.u32 %v4778_v51, %v1102_v35  ;;  %v3697_v54 = vsub.s32 32, %v1206_v20  ;;  %v1109_v57 = vshrl.u32 %v4784_v47, %v3667_v2  ;;  %v1115_v49 = vshrl.u32 %v4778_v51, %v3667_v2 }
 0x1af   : > { %v1118_v19 = vshrl.u32 %v4779_v42, %v3667_v2  ;;  %v1300_v59 = vshrl.u32 %v1299_v41, 23  ;;  %v3705_v63 = vshrl.u32 %v1204_v62, 5  ;;  %v1218_v25 = vshll.u32 %v4781_v38, %v1206_v20 }
 0x1b0   : > { %v1210_v55 = vshrl.u32 %v4783_v45, %v3697_v54  ;;  %v1213_v35 = vshrl.u32 %v4784_v47, %v3697_v54  ;;  %v1216_v1 = vshrl.u32 %v4781_v38, %v3697_v54  ;;  %v1219_v61 = vshrl.u32 %v4778_v51, %v3697_v54 }
 0x1b1   : > { %v1221_v7 = vshll.u32 %v4778_v51, %v1206_v20  ;;  %v1222_v62 = vshrl.u32 %v4779_v42, %v3697_v54  ;;  %v1112_v41 = vshrl.u32 %v4781_v38, %v3667_v2  ;;  %v1209_v46 = vshll.u32 %v4777_v13, %v1206_v20 }
 0x1b2   : > { %v1212_v3 = vshll.u32 %v4783_v45, %v1206_v20  ;;  %v1215_v40 = vshll.u32 %v4784_v47, %v1206_v20  ;;  %v1116_v58 = vor.u32 %v1115_v49, %v1114_v17  ;;  %v1220_v12 = vor.u32 %v1219_v61, %v1218_v25 }
 0x1b3   : > { %v1223_v53 = vor.u32 %v1222_v62, %v1221_v7  ;;  %v2598_v34 = vadd.s32 4294967169, %v1300_v59  ;;  %v3724_v56 = vor.u32 %v1210_v55, %v1209_v46  ;;  %vm1227_vm2 = vcmp.lt.s32.totalorder %v3705_v63, 4 }
 0x1b4   : > { %v3726_v30 = vor.u32 %v1213_v35, %v1212_v3  ;;  %v1217_v28 = vor.u32 %v1216_v1, %v1215_v40  ;;  %v1107_v21 = vor.u32 %v1106_v60, %v1105_v31  ;;  %v1119_v18 = vor.u32 %v1118_v19, %v1117_v8 }
 0x1b5   : > { %v1200_v33 = vor.u32 8388608, %v3686_v10  ;;  %v1233_v27 = vsel %vm1227_vm2, %v1220_v12, 920167782  ;;  %v1110_v50 = vor.u32 %v1109_v57, %v1108_v16  ;;  %v1113_v20 = vor.u32 %v1112_v41, %v1111_v44 }
 0x1b6   : > { %vm1123_vm3 = vcmp.lt.s32.totalorder %v3688_v11, 4  ;;  %v1237_v61 = vsel %vm1227_vm2, %v1223_v53, 1326507024  ;;  %vm1224_vm4 = vcmp.lt.s32.totalorder %v3705_v63, 1  ;;  %vm1226_vm7 = vcmp.lt.s32.totalorder %v3705_v63, 3 }
 0x1b7   : > { %v1129_v3 = vsel %vm1123_vm3, %v1116_v58, 920167782  ;;  %v1306_v40 = vadd.s32 1, %v2598_v34  ;;  %vm707_vm13 = vcmp.lt.s32.totalorder %v3653_v5, 4  ;;  %v1232_v1 = vsel %vm1224_vm4, %v3724_v56, %v3726_v30 }
 0x1b8   : > { %v1234_v55 = vsel %vm1226_vm7, %v1217_v28, %v1233_v27  ;;  %v1236_v53 = vsel %vm1224_vm4, %v3726_v30, %v1217_v28  ;;  %v1238_v25 = vsel %vm1226_vm7, %v1220_v12, %v1237_v61  ;;  %v1096_v7 = vor.u32 8388608, %v3682_v36 }
 0x1b9   : > { %vm1120_vm15 = vcmp.lt.s32.totalorder %v3688_v11, 1  ;;  %vm1122_vm11 = vcmp.lt.s32.totalorder %v3688_v11, 3  ;;  %v1133_v34 = vsel %vm1123_vm3, %v1119_v18, 1326507024  ;;  %v1045_v46 = vadd.s32 536870912, %v3678_v15 }
 0x1ba   : > { %v1128_v27 = vsel %vm1120_vm15, %v1107_v21, %v1110_v50  ;;  %v1130_v10 = vsel %vm1122_vm11, %v1113_v20, %v1129_v3  ;;  %vm1225_vm12 = vcmp.lt.s32.totalorder %v3705_v63, 2  ;;  %vm1121_vm14 = vcmp.lt.s32.totalorder %v3688_v11, 2  ;;  %v549_v63 = vpop.permute.xlu1 %548 }
 0x1bb   : > { %v1235_v12 = vsel %vm1225_vm12, %v1232_v1, %v1234_v55  ;;  %v1239_v36 = vsel %vm1225_vm12, %v1236_v53, %v1238_v25  ;;  %vm1307_vm0 = vcmp.gt.s32.totalorder %v1306_v40, 0  ;;  %v1132_v18 = vsel %vm1120_vm15, %v1110_v50, %v1113_v20 }
 0x1bc   : > { %v1134_v31 = vsel %vm1122_vm11, %v1116_v58, %v1133_v34  ;;  %v3771_v16 = vshll.u32 %v1200_v33, 8  ;;  %v1308_v44 = vsel %vm1307_vm0, %v1306_v40, 0  ;;  %v3775_v60 = vshll.u32 %v4781_v38, %v3643_v26 }
 0x1bd   : > { %v602_v17 = vsel %vm594_vm5, %v3675_v32, %v3342_v24  ;;  %v1131_v8 = vsel %vm1121_vm14, %v1128_v27, %v1130_v10  ;;  %v3782_v57 = vshll.u32 %v1096_v7, 8  ;;  %v4794_v59 = vsub.s32 0, %v3646_v14 }
 0x1be   : > { %v3785_v49 = vmul.u32.u64.low %v3771_v16, %v1239_v36  ;;  %v3786_v19 = vmul.u32.u64.high %v3771_v16, %v1239_v36, %v3785_v49  ;;  %v3789_v58 = vmul.u32.u64.low %v3771_v16, %v1235_v12  ;;  %v3790_v33 = vmul.u32.u64.high %v3771_v16, %v1235_v12, %v3789_v58 }
 0x1bf   : > { %v2583_v35 = vmin.u32 %v4794_v59, %v3646_v14  ;;  %v1125_v24 = vsel %vm1123_vm3, %v1113_v20, 2102212464  ;;  %v1135_v32 = vsel %vm1121_vm14, %v1132_v18, %v1134_v31  ;;  %v1310_v62 = vand.u32 31, %v1308_v44 }
 0x1c0   : > { %v3800_v41 = vshrl.u32 %v1045_v46, 30  ;;  %v1104_v61 = vshrl.u32 %v4777_v13, %v3667_v2  ;;  %v3805_v3 = vmul.u32.u64.low %v3782_v57, %v1131_v8  ;;  %v3806_v40 = vmul.u32.u64.high %v3782_v57, %v1131_v8, %v3805_v3 }
 0x1c1   : > { %v3812_v1 = vsel %vm707_vm13, %v3659_v43, 920167782  ;;  %v3816_v20 = vshll.u32 %v4778_v51, %v3643_v26  ;;  %v611_v55 = vsel %vm603_vm6, %v602_v17, %v3360_v37  ;;  %v3820_v53 = vsub.s32 32, %v1310_v62 }
 0x1c2   : > { %v1124_v2 = vsel %vm1120_vm15, %v1104_v61, %v1107_v21  ;;  %v1126_v25 = vsel %vm1122_vm11, %v1110_v50, %v1125_v24  ;;  %v3827_v7 = vmul.u32.u64.low %v3782_v57, %v1135_v32  ;;  %v3828_v34 = vmul.u32.u64.high %v3782_v57, %v1135_v32, %v3827_v7 }
 0x1c3   : > { %v4795_v46 = vor.u32 %v3632_v39, %v3639_v29  ;;  %vm4796_vm5 = vcmask 343040   ;;  %v1208_v21 = vshrl.u32 %v4777_v13, %v3697_v54  ;;  %v1229_v50 = vsel %vm1227_vm2, %v1217_v28, 2102212464  ;;  %v4797_v39 = vld [vmem:[#allocation10_spill] sm:$0xff] }
 0x1c4   : > { %v620_v37 = vsel %vm4796_vm5, %v611_v55, %v3376_v22  ;;  %v803_v10 = vshrl.u32 %v4778_v51, %v3670_v48  ;;  %v948_v12 = vclz %v2583_v35  ;;  %v1047_v36 = vshll.u32 %v3800_v41, 30 }
 0x1c5   : > { %v3835_v27 = vsel %vm707_vm13, %v4795_v46, 1326507024  ;;  %v629_v29 = vsel %vm621_vm8, %v620_v37, %v4797_v39  ;;  %v1127_v18 = vsel %vm1121_vm14, %v1124_v2, %v1126_v25  ;;  %v1228_v22 = vsel %vm1224_vm4, %v1208_v21, %v3724_v56  ;;  %v4798_v39 = vld [vmem:[#allocation12_spill] sm:$0xff] }
 0x1c6   : > { %v4762_v54 = vand.u32 2147483647, %v3651_v52  ;;  %v1323_v28 = vshrl.u32 %v4778_v51, %v3820_v53  ;;  %v1230_v31 = vsel %vm1226_vm7, %v3726_v30, %v1229_v50  ;;  %vm1249_vm6 = vc.u32 %v3786_v19, %v3789_v58 }
 0x1c7   : > { %v1250_v17 = vadd.s32 1, %v3790_v33  ;;  %v1322_v11 = vshll.u32 %v4781_v38, %v1310_v62  ;;  %v3863_v8 = vshrl.u32 %v1308_v44, 5  ;;  %v1314_v56 = vshrl.u32 %v4783_v45, %v3820_v53 }
 0x1c8   : > { %v1317_v49 = vshrl.u32 %v4784_v47, %v3820_v53  ;;  %v1320_v59 = vshrl.u32 %v4781_v38, %v3820_v53  ;;  %v1146_v30 = vadd.s32 1, %v3806_v40  ;;  %v1325_v24 = vshll.u32 %v4778_v51, %v1310_v62 }
 0x1c9   : > { %v1324_v35 = vor.u32 %v1323_v28, %v1322_v11  ;;  %v1326_v32 = vshrl.u32 %v4779_v42, %v3820_v53  ;;  %v1231_v44 = vsel %vm1225_vm12, %v1228_v22, %v1230_v31  ;;  %v1313_v61 = vshll.u32 %v4777_v13, %v1310_v62  ;;  %v2847_v31 = vld [vmem:[%s4712_s2 + $0x8] sm:$0xff]  }
 0x1ca   : > { %v1316_v55 = vshll.u32 %v4783_v45, %v1310_v62  ;;  %v1319_v2 = vshll.u32 %v4784_v47, %v1310_v62  ;;  %vm1145_vm8 = vc.u32 %v3828_v34, %v3805_v3  ;;  %v1251_v25 = vsel %vm1249_vm6, %v1250_v17, %v3790_v33  ;;  %v2848_v17 = vld [vmem:[%s4712_s2] sm:$0xff]   ;;  %2712 = vmatprep.subr.bf16.mxu0 %v2847_v31 }
 0x1cb   : > { %v1303_v7 = vand.u32 8388607, %v4762_v54  ;;  %v1327_v46 = vor.u32 %v1326_v32, %v1325_v24  ;;  %v3888_v37 = vor.u32 %v1314_v56, %v1313_v61  ;;  %vm1331_vm1 = vcmp.lt.s32.totalorder %v3863_v8, 4  ;;  %2713 = vmatpush3.bf16.msra.mxu0 %v2847_v31 }
 0x1cc   : > { %v3890_v21 = vor.u32 %v1317_v49, %v1316_v55  ;;  %v1321_v50 = vor.u32 %v1320_v59, %v1319_v2  ;;  %v3895_v62 = vshrl.u32 %v4779_v42, %v3670_v48  ;;  %v638_v22 = vsel %vm630_vm9, %v629_v29, %v4798_v39  ;;  %2714 = vmatprep.subr.bf16.mxu0 %v2848_v17 }
 0x1cd   : > { %v1247_v33 = vmul.u32 %v3771_v16, %v1231_v44  ;;  %v1337_v28 = vsel %vm1331_vm1, %v1324_v35, 920167782  ;;  %v2584_v11 = vadd.s32 4294967294, %v948_v12  ;;  %v1147_v56 = vsel %vm1145_vm8, %v1146_v30, %v3806_v40 }
 0x1ce   : > { %v1341_v16 = vsel %vm1331_vm1, %v1327_v46, 1326507024  ;;  %v3915_v29 = vsel %vm639_vm10, %v638_v22, %v549_v63  ;;  %v1143_v49 = vmul.u32 %v3782_v57, %v1127_v18  ;;  %vm1328_vm9 = vcmp.lt.s32.totalorder %v3863_v8, 1 }
 0x1cf   : > { %v3918_v59 = vadd.s32 %v1251_v25, %v1247_v33  ;;  %vm1330_vm2 = vcmp.lt.s32.totalorder %v3863_v8, 3  ;;  %v3923_v12 = vsub.s32 %v3678_v15, %v1047_v36  ;;  %v1304_v24 = vor.u32 8388608, %v1303_v7  ;;  %2715 = vmatpush3.bf16.msra.mxu0 %v2848_v17 }
 0x1d0   : > { %v1336_v40 = vsel %vm1328_vm9, %v3888_v37, %v3890_v21  ;;  %v1338_v30 = vsel %vm1330_vm2, %v1321_v50, %v1337_v28  ;;  %v3931_v57 = vadd.s32 %v1147_v56, %v1143_v49  ;;  %v1340_v18 = vsel %vm1328_vm9, %v3890_v21, %v1321_v50 }
 0x1d1   : > { %v1342_v15 = vsel %vm1330_vm2, %v1324_v35, %v1341_v16  ;;  %v659_v36 = vmul.f32 %v3303_v0, %v3915_v29  ;;  %v3941_v32 = vor.u32 %v803_v10, %v3775_v60  ;;  %vm1329_vm10 = vcmp.lt.s32.totalorder %v3863_v8, 2 }
 0x1d2   : > { %v690_v61 = vshrl.u32 %v4783_v45, %v3602_v6  ;;  %v1253_v55 = vadd.s32 536870912, %v3918_v59  ;;  %v1339_v35 = vsel %vm1329_vm10, %v1336_v40, %v1338_v30  ;;  %v693_v0 = vshrl.u32 %v4784_v47, %v3602_v6 }
 0x1d3   : > { %v3952_v2 = vadd.f32 %v3311_v4, %v659_v36  ;;  %vm2585_vm3 = vcmp.lt.s32.totalorder %v2584_v11, 0  ;;  %v1050_v60 = vsub.s32 0, %v3923_v12  ;;  %v1343_v10 = vsel %vm1329_vm10, %v1340_v18, %v1342_v15  ;;  %v4799_v18 = vld [vmem:[#allocation13_spill] sm:$0xff] }
 0x1d4   : > { %v3959_v25 = vshll.u32 %v1304_v24, 8  ;;  %v1149_v7 = vadd.s32 536870912, %v3931_v57  ;;  %v689_v46 = vshll.u32 %v4777_v13, %v3576_v23  ;;  %v692_v4 = vshll.u32 %v4783_v45, %v3576_v23 }
 0x1d5   : > { %v696_v63 = vshrl.u32 %v4781_v38, %v3602_v6  ;;  %v1403_v33 = vand.u32 2139095040, %v3952_v2  ;;  %v695_v28 = vshll.u32 %v4784_v47, %v3576_v23  ;;  %v3976_v31 = vsel %vm2585_vm3, 0, %v2584_v11 }
 0x1d6   : > { %v3969_v39 = vmul.u32.u64.low %v3959_v25, %v1339_v35  ;;  %v3970_v22 = vmul.u32.u64.high %v3959_v25, %v1339_v35, %v3969_v39  ;;  %v3978_v17 = vshrl.u32 %v1253_v55, 30  ;;  %v2587_v49 = vmin.u32 %v1050_v60, %v3923_v12 }
 0x1d7   : > { %v3981_v56 = vmul.u32.u64.low %v3959_v25, %v1343_v10  ;;  %v3982_v16 = vmul.u32.u64.high %v3959_v25, %v1343_v10, %v3981_v56  ;;  %v1404_v24 = vshrl.u32 %v1403_v33, 23  ;;  %v691_v40 = vor.u32 %v690_v61, %v689_v46 }
 0x1d8   : > { %v694_v30 = vor.u32 %v693_v0, %v692_v4  ;;  %v936_v15 = vadd.s32 %v4799_v18, %v3444_v9  ;;  %v3987_v36 = vshrl.u32 %v1149_v7, 30  ;;  %v688_v23 = vshrl.u32 %v4777_v13, %v3602_v6 }
 0x1d9   : > { %v697_v11 = vor.u32 %v696_v63, %v695_v28  ;;  %v956_v55 = vsub.s32 4294967266, %v3976_v31  ;;  %v1333_v35 = vsel %vm1331_vm1, %v1321_v50, 2102212464  ;;  %v2602_v10 = vadd.s32 4294967169, %v1404_v24 }
 0x1da   : > { %vm704_vm4 = vcmp.lt.s32.totalorder %v3653_v5, 1  ;;  %v1255_v61 = vshll.u32 %v3978_v17, 30  ;;  %v1312_v0 = vshrl.u32 %v4777_v13, %v3820_v53  ;;  %vm705_vm7 = vcmp.lt.s32.totalorder %v3653_v5, 2 }
 0x1db   : > { %vm706_vm15 = vcmp.lt.s32.totalorder %v3653_v5, 3  ;;  %v1052_v9 = vclz %v2587_v49  ;;  %v1410_v6 = vadd.s32 1, %v2602_v10  ;;  %v712_v60 = vsel %vm704_vm4, %v691_v40, %v694_v30 }
 0x1dc   : > { %v718_v50 = vsel %vm706_vm15, %v3659_v43, %v3835_v27  ;;  %v1151_v7 = vshll.u32 %v3987_v36, 30  ;;  %v1332_v53 = vsel %vm1328_vm9, %v1312_v0, %v3888_v37  ;;  %v1334_v46 = vsel %vm1330_vm2, %v3890_v21, %v1333_v35 }
 0x1dd   : > { %v714_v4 = vsel %vm706_vm15, %v697_v11, %v3812_v1  ;;  %v957_v63 = vadd.s32 127, %v956_v55  ;;  %v1354_v33 = vadd.s32 1, %v3970_v22  ;;  %vm1411_vm11 = vcmp.gt.s32.totalorder %v1410_v6, 0 }
 0x1de   : > { %v716_v43 = vsel %vm704_vm4, %v694_v30, %v697_v11  ;;  %v4020_v27 = vsub.s32 %v3918_v59, %v1255_v61  ;;  %vm1353_vm12 = vc.u32 %v3982_v16, %v3969_v39  ;;  %v1412_v37 = vsel %vm1411_vm11, %v1410_v6, 0 }
 0x1df   : > { %v709_v21 = vsel %vm707_vm13, %v697_v11, 2102212464  ;;  %v2588_v28 = vadd.s32 4294967294, %v1052_v9  ;;  %v1335_v1 = vsel %vm1329_vm10, %v1332_v53, %v1334_v46  ;;  %v1414_v56 = vand.u32 31, %v1412_v37  ;;  %v4800_v9 = vld [vmem:[#allocation23_spill] sm:$0xff] }
 0x1e0   : > { %v715_v49 = vsel %vm705_vm7, %v712_v60, %v714_v4  ;;  %v952_v24 = vsub.s32 32, %v3976_v31  ;;  %v4032_v59 = vsub.s32 %v3931_v57, %v1151_v7  ;;  %v708_v18 = vsel %vm704_vm4, %v688_v23, %v691_v40 }
 0x1e1   : > { %v719_v55 = vsel %vm705_vm7, %v716_v43, %v718_v50  ;;  %v958_v11 = vshll.u32 %v957_v63, 23  ;;  %v1355_v35 = vsel %vm1353_vm12, %v1354_v33, %v3970_v22  ;;  %v1415_v8 = vsub.s32 32, %v1414_v56  ;;  %v4801_v22 = vld [vmem:[#allocation20_spill] sm:$0xff] }
 0x1e2   : > { %v710_v10 = vsel %vm706_vm15, %v694_v30, %v709_v21  ;;  %v1258_v61 = vsub.s32 0, %v4020_v27  ;;  %v1351_v0 = vmul.u32 %v3959_v25, %v1335_v1  ;;  %vm2589_vm13 = vcmp.lt.s32.totalorder %v2588_v28, 0 }
 0x1e3   : > { %v4044_v57 = vmul.u32.u64.low %v4800_v9, %v715_v49  ;;  %v4045_v6 = vmul.u32.u64.high %v4800_v9, %v715_v49, %v4044_v57  ;;  %v4763_v40 = vand.u32 2147483647, %v3952_v2  ;;  %v1154_v30 = vsub.s32 0, %v4032_v59 }
 0x1e4   : > { %v4050_v23 = vmul.u32.u64.low %v4800_v9, %v719_v55  ;;  %v4051_v60 = vmul.u32.u64.high %v4800_v9, %v719_v55, %v4050_v23  ;;  %v4055_v7 = vadd.s32 %v1355_v35, %v1351_v0  ;;  %v1418_v25 = vshrl.u32 %v4783_v45, %v1415_v8 }
 0x1e5   : > { %v953_v53 = vshll.u32 %v3646_v14, %v3976_v31  ;;  %v954_v46 = vshrl.u32 %v936_v15, %v952_v24  ;;  %v4060_v4 = vor.u32 4788187, %v958_v11  ;;  %v711_v63 = vsel %vm705_vm7, %v708_v18, %v710_v10 }
 0x1e6   : > { %v4064_v33 = vsel %vm2589_vm13, 0, %v2588_v28  ;;  %v4067_v43 = vmin.u32 %v1258_v61, %v4020_v27  ;;  %v1417_v21 = vshll.u32 %v4777_v13, %v1414_v56  ;;  %v1421_v1 = vshrl.u32 %v4784_v47, %v1415_v8 }
 0x1e7   : > { %v1407_v49 = vand.u32 8388607, %v4763_v40  ;;  %v1420_v14 = vshll.u32 %v4783_v45, %v1414_v56  ;;  %v1423_v31 = vshll.u32 %v4784_v47, %v1414_v56  ;;  %v1424_v15 = vshrl.u32 %v4781_v38, %v1415_v8 }
 0x1e8   : > { %v4077_v5 = vmin.u32 %v1154_v30, %v4032_v59  ;;  %v1357_v28 = vadd.s32 536870912, %v4055_v7  ;;  %v1413_v24 = vshrl.u32 %v1412_v37, 5  ;;  %v1419_v18 = vor.u32 %v1418_v25, %v1417_v21  ;;  %v4802_v30 = vld [vmem:[#allocation6_spill] sm:$0xff] }
 0x1e9   : > { %v1422_v55 = vor.u32 %v1421_v1, %v1420_v14  ;;  %v1425_v11 = vor.u32 %v1424_v15, %v1423_v31  ;;  %v1426_v35 = vshll.u32 %v4781_v38, %v1414_v56  ;;  %v1427_v10 = vshrl.u32 %v4778_v51, %v1415_v8 }
 0x1ea   : > { %v1429_v61 = vshll.u32 %v4778_v51, %v1414_v56  ;;  %v1430_v0 = vshrl.u32 %v4779_v42, %v1415_v8  ;;  %v727_v23 = vmul.u32 %v4800_v9, %v711_v63  ;;  %v730_v54 = vadd.s32 1, %v4045_v6 }
 0x1eb   : > { %vm882_vm14 = vcmp.lt.s32.totalorder %v4802_v30, 0  ;;  %v1260_v40 = vclz %v4067_v43  ;;  %v1408_v37 = vor.u32 8388608, %v1407_v49  ;;  %v1428_v25 = vor.u32 %v1427_v10, %v1426_v35 }
 0x1ec   : > { %vm729_vm0 = vc.u32 %v4051_v60, %v4044_v57  ;;  %v4090_v21 = vshrl.u32 %v1357_v28, 30  ;;  %v1431_v1 = vor.u32 %v1430_v0, %v1429_v61  ;;  %vm1432_vm5 = vcmp.lt.s32.totalorder %v1413_v24, 1 }
 0x1ed   : > { %vm1435_vm6 = vcmp.lt.s32.totalorder %v1413_v24, 4  ;;  %vm1434_vm8 = vcmp.lt.s32.totalorder %v1413_v24, 3  ;;  %v1440_v42 = vsel %vm1432_vm5, %v1419_v18, %v1422_v55  ;;  %v1416_v9 = vshrl.u32 %v4777_v13, %v1415_v8 }
 0x1ee   : > { %v1437_v51 = vsel %vm1435_vm6, %v1425_v11, 2102212464  ;;  %v1441_v56 = vsel %vm1435_vm6, %v1428_v25, 920167782  ;;  %vm1433_vm1 = vcmp.lt.s32.totalorder %v1413_v24, 2  ;;  %v731_v43 = vsel %vm729_vm0, %v730_v54, %v4045_v6 }
 0x1ef   : > { %v1442_v63 = vsel %vm1434_vm8, %v1425_v11, %v1441_v56  ;;  %v1444_v14 = vsel %vm1432_vm5, %v1422_v55, %v1425_v11  ;;  %v1445_v31 = vsel %vm1435_vm6, %v1431_v1, 1326507024  ;;  %v1448_v15 = vshll.u32 %v1408_v37, 8  ;;  %v4803_v56 = vld [vmem:[#allocation24_spill] sm:$0xff] }
 0x1f0   : > { %v1443_v49 = vsel %vm1433_vm1, %v1440_v42, %v1442_v63  ;;  %v1359_v28 = vshll.u32 %v4090_v21, 30  ;;  %v1436_v35 = vsel %vm1432_vm5, %v1416_v9, %v1419_v18  ;;  %v1438_v10 = vsel %vm1434_vm8, %v1422_v55, %v1437_v51 }
 0x1f1   : > { %v1446_v61 = vsel %vm1434_vm8, %v1428_v25, %v1445_v31  ;;  %v4097_v50 = vmul.u32.u64.low %v1448_v15, %v1443_v49  ;;  %v4098_v44 = vmul.u32.u64.high %v1448_v15, %v1443_v49, %v4097_v50  ;;  %v732_v8 = vadd.s32 %v731_v43, %v727_v23  ;;  %v4807_v31 = vld [vmem:[#allocation19_spill] sm:$0xff] }
 0x1f2   : > { %v1447_v0 = vsel %vm1433_vm1, %v1444_v14, %v1446_v61  ;;  %vm811_vm9 = vcmp.lt.s32.totalorder %v4803_v56, 4  ;;  %v955_v54 = vor.u32 %v954_v46, %v953_v53  ;;  %v1060_v18 = vsub.s32 4294967266, %v4064_v33 }
 0x1f3   : > { %v4102_v6 = vmul.u32.u64.low %v1448_v15, %v1447_v0  ;;  %v4103_v42 = vmul.u32.u64.high %v1448_v15, %v1447_v0, %v4102_v6  ;;  %v4108_v11 = vsel %vm811_vm9, %v3941_v32, 920167782  ;;  %v1439_v55 = vsel %vm1433_vm1, %v1436_v35, %v1438_v10 }
 0x1f4   : > { %v733_v37 = vadd.s32 536870912, %v732_v8  ;;  %v4804_v25 = vor.u32 %v3895_v62, %v3816_v20  ;;  %v960_v53 = vand.u32 2147483647, %v4060_v4  ;;  %v4805_v46 = vsub.s32 4, %v4801_v22 }
 0x1f5   : > { %v1156_v24 = vclz %v4077_v5  ;;  %v2596_v51 = vadd.s32 4294967294, %v1260_v40  ;;  %v4129_v9 = vsub.s32 %v4055_v7, %v1359_v28  ;;  %v1458_v20 = vadd.s32 1, %v4098_v44  ;;  %v4806_v40 = vld [vmem:[#allocation11_spill] sm:$0xff]  ;;  %v4808_v28 = vld [vmem:[#allocation18_spill] sm:$0xff] }
 0x1f6   : > { %v4117_v23 = vsel %vm811_vm9, %v4804_v25, 1326507024  ;;  %v4125_v1 = vsel %vm882_vm14, %v4805_v46, %v4801_v22  ;;  %v4132_v62 = vshrl.u32 %v733_v37, 30  ;;  %v962_v63 = vcvt.s32.f32 %v955_v54 }
 0x1f7   : > { %v1056_v4 = vsub.s32 32, %v4064_v33  ;;  %v1455_v43 = vmul.u32 %v1448_v15, %v1439_v55  ;;  %vm1457_vm2 = vc.u32 %v4103_v42, %v4097_v50  ;;  %v1061_v49 = vadd.s32 127, %v1060_v18 }
 0x1f8   : > { %v1459_v22 = vsel %vm1457_vm2, %v1458_v20, %v4098_v44  ;;  %v735_v5 = vshll.u32 %v4132_v62, 30  ;;  %v776_v14 = vand.u32 2147483647, %v4806_v40  ;;  %v4140_v7 = vmul.f32 %v962_v63, %v960_v53 }
 0x1f9   : > { %v1040_v35 = vadd.s32 %v4808_v28, %v4807_v31  ;;  %v1057_v10 = vshll.u32 %v3923_v12, %v4064_v33  ;;  %v1460_v61 = vadd.s32 %v1459_v22, %v1455_v43  ;;  %v2592_v15 = vadd.s32 4294967294, %v1156_v24 }
 0x1fa   : > { %vm2597_vm10 = vcmp.lt.s32.totalorder %v2596_v51, 0  ;;  %v1362_v0 = vsub.s32 0, %v4129_v9  ;;  %v4147_v54 = vsub.s32 %v732_v8, %v735_v5  ;;  %v794_v6 = vshrl.u32 %v4783_v45, %v3670_v48 }
 0x1fb   : > { %v1461_v44 = vadd.s32 536870912, %v1460_v61  ;;  %v797_v18 = vshrl.u32 %v4784_v47, %v3670_v48  ;;  %v800_v55 = vshrl.u32 %v4781_v38, %v3670_v48  ;;  %v1058_v37 = vshrl.u32 %v1040_v35, %v1056_v4 }
 0x1fc   : > { %v1062_v25 = vshll.u32 %v1061_v49, 23  ;;  %v738_v12 = vsub.s32 0, %v4147_v54  ;;  %v783_v33 = vand.u32 8388607, %v776_v14  ;;  %v793_v8 = vshll.u32 %v4777_v13, %v3643_v26 }
 0x1fd   : > { %v4158_v53 = vshrl.u32 %v1461_v44, 30  ;;  %v796_v46 = vshll.u32 %v4783_v45, %v3643_v26  ;;  %v799_v24 = vshll.u32 %v4784_v47, %v3643_v26  ;;  %vm2593_vm3 = vcmp.lt.s32.totalorder %v2592_v15, 0 }
 0x1fe   : > { %v4167_v38 = vsel %vm2597_vm10, 0, %v2596_v51  ;;  %v2599_v20 = vmin.u32 %v1362_v0, %v4129_v9  ;;  %v2575_v63 = vmin.u32 %v738_v12, %v4147_v54  ;;  %v795_v43 = vor.u32 %v794_v6, %v793_v8 }
 0x1ff   : > { %v1463_v4 = vshll.u32 %v4158_v53, 30  ;;  %v798_v49 = vor.u32 %v797_v18, %v796_v46  ;;  %v801_v22 = vor.u32 %v800_v55, %v799_v24  ;;  %v964_v5 = vxor.u32 2147483648, %v4140_v7 }
 0x200   : > { %v1059_v31 = vor.u32 %v1058_v37, %v1057_v10  ;;  %v1063_v45 = vor.u32 4788187, %v1062_v25  ;;  %v740_v28 = vclz %v2575_v63  ;;  %v4173_v35 = vsel %vm2593_vm3, 0, %v2592_v15 }
 0x201   : > { %v1268_v47 = vsub.s32 4294967266, %v4167_v38  ;;  %v4176_v26 = vsub.s32 %v1460_v61, %v1463_v4  ;;  %v784_v51 = vor.u32 8388608, %v783_v33  ;;  %v4809_v0 = vand.u32 2147483647, %v4802_v30 }
 0x202   : > { %v1364_v6 = vclz %v2599_v20  ;;  %v2576_v18 = vadd.s32 4294967294, %v740_v28  ;;  %vm808_vm7 = vcmp.lt.s32.totalorder %v4803_v56, 1  ;;  %vm810_vm15 = vcmp.lt.s32.totalorder %v4803_v56, 3 }
 0x203   : > { %vm4180_vm4 = vcmp.le.f32.partialorder %v4809_v0, 0.7853982  ;;  %v1466_v10 = vsub.s32 0, %v4176_v26  ;;  %v816_v15 = vsel %vm808_vm7, %v795_v43, %v798_v49  ;;  %v818_v61 = vsel %vm810_vm15, %v801_v22, %v4108_v11 }
 0x204   : > { %v820_v55 = vsel %vm808_vm7, %v798_v49, %v801_v22  ;;  %v1066_v37 = vcvt.s32.f32 %v1059_v31  ;;  %vm2577_vm11 = vcmp.lt.s32.totalorder %v2576_v18, 0  ;;  %vm809_vm12 = vcmp.lt.s32.totalorder %v4803_v56, 2 }
 0x205   : > { %v822_v25 = vsel %vm810_vm15, %v3941_v32, %v4117_v23  ;;  %v1064_v12 = vand.u32 2147483647, %v1063_v45  ;;  %v1164_v33 = vsub.s32 4294967266, %v4173_v35  ;;  %v2603_v8 = vmin.u32 %v1466_v10, %v4176_v26 }
 0x206   : > { %v823_v11 = vsel %vm809_vm12, %v820_v55, %v822_v25  ;;  %v1248_v46 = vadd.s32 %v3789_v58, %v3786_v19  ;;  %v1269_v24 = vadd.s32 127, %v1268_v47  ;;  %v819_v20 = vsel %vm809_vm12, %v816_v15, %v818_v61  ;;  %v4812_v55 = vld [vmem:[#allocation8_spill] sm:$0xff] }
 0x207   : > { %v824_v63 = vshll.u32 %v784_v51, 8  ;;  %v2600_v4 = vadd.s32 4294967294, %v1364_v6  ;;  %v1468_v31 = vclz %v2603_v8  ;;  %v4207_v28 = vsel %vm2577_vm11, 0, %v2576_v18 }
 0x208   : > { %v813_v32 = vsel %vm811_vm9, %v801_v22, 2102212464  ;;  %v1264_v23 = vsub.s32 32, %v4167_v38  ;;  %v792_v45 = vshrl.u32 %v4777_v13, %v3670_v48  ;;  %v1165_v19 = vadd.s32 127, %v1164_v33 }
 0x209   : > { %v4214_v0 = vmul.u32.u64.low %v824_v63, %v823_v11  ;;  %v4215_v10 = vmul.u32.u64.high %v824_v63, %v823_v11, %v4214_v0  ;;  %v2604_v58 = vadd.s32 4294967294, %v1468_v31  ;;  %v1270_v51 = vshll.u32 %v1269_v24, 23 }
 0x20a   : > { %v4217_v47 = vmul.u32.u64.low %v824_v63, %v819_v20  ;;  %v4218_v15 = vmul.u32.u64.high %v824_v63, %v819_v20, %v4217_v47  ;;  %v748_v6 = vsub.s32 4294967266, %v4207_v28  ;;  %v812_v22 = vsel %vm808_vm7, %v792_v45, %v795_v43 }
 0x20b   : > { %v814_v18 = vsel %vm810_vm15, %v798_v49, %v813_v32  ;;  %v969_v13 = vsel %vm4180_vm4, 0, %v4125_v1  ;;  %v1160_v48 = vsub.s32 32, %v4173_v35  ;;  %vm2601_vm13 = vcmp.lt.s32.totalorder %v2600_v4, 0 }
 0x20c   : > { %vm2605_vm0 = vcmp.lt.s32.totalorder %v2604_v58, 0  ;;  %v965_v61 = vsel %vm882_vm14, %v964_v5, %v4140_v7  ;;  %vm986_vm5 = vcmp.lt.s32.totalorder %v4812_v55, 0  ;;  %v1067_v25 = vmul.f32 %v1066_v37, %v1064_v12 }
 0x20d   : > { %v1266_v33 = vshrl.u32 %v1248_v46, %v1264_v23  ;;  %v4234_v43 = vsel %vm2605_vm0, 0, %v2604_v58  ;;  %v1144_v49 = vadd.s32 %v3805_v3, %v3828_v34  ;;  %v1166_v8 = vshll.u32 %v1165_v19, 23 }
 0x20e   : > { %v1265_v11 = vshll.u32 %v4020_v27, %v4167_v38  ;;  %v815_v24 = vsel %vm809_vm12, %v812_v22, %v814_v18  ;;  %v1271_v20 = vor.u32 4788187, %v1270_v51  ;;  %v4242_v31 = vsel %vm2601_vm13, 0, %v2600_v4 }
 0x20f   : > { %v749_v7 = vadd.s32 127, %v748_v6  ;;  %vm833_vm14 = vc.u32 %v4215_v10, %v4217_v47  ;;  %v968_v5 = vsel %vm4180_vm4, %v4802_v30, %v965_v61  ;;  %v4813_v3 = vand.u32 2147483647, %v4812_v55 }
 0x210   : > { %v1162_v27 = vshrl.u32 %v1144_v49, %v1160_v48  ;;  %v1476_v56 = vsub.s32 4294967266, %v4234_v43  ;;  %v834_v38 = vadd.s32 1, %v4218_v15  ;;  %v1068_v37 = vxor.u32 2147483648, %v1067_v25 }
 0x211   : > { %vm4251_vm6 = vcmp.le.f32.partialorder %v4813_v3, 0.7853982  ;;  %v1267_v12 = vor.u32 %v1266_v33, %v1265_v11  ;;  %v744_v46 = vsub.s32 32, %v4207_v28  ;;  %v831_v4 = vmul.u32 %v824_v63, %v815_v24  ;;  %v4816_v3 = vld [vmem:[#allocation3_spill] sm:$0xff] }
 0x212   : > { %v1161_v32 = vshll.u32 %v4032_v59, %v4173_v35  ;;  %v1167_v23 = vor.u32 4788187, %v1166_v8  ;;  %v1372_v45 = vsub.s32 4294967266, %v4242_v31  ;;  %v835_v0 = vsel %vm833_vm14, %v834_v38, %v4218_v15 }
 0x213   : > { %v1272_v19 = vand.u32 2147483647, %v1271_v20  ;;  %v728_v58 = vadd.s32 %v4044_v57, %v4051_v60  ;;  %v750_v51 = vshll.u32 %v749_v7, 23  ;;  %v836_v6 = vadd.s32 %v835_v0, %v831_v4 }
 0x214   : > { %2859 = vcosq.f32 %v968_v5  ;;  %v1070_v22 = vsub.s32 4, %v3800_v41  ;;  %v1163_v18 = vor.u32 %v1162_v27, %v1161_v32  ;;  %v1477_v48 = vadd.s32 127, %v1476_v56  ;;  %v4818_v27 = vld [vmem:[#allocation22_spill] sm:$0xff] }
 0x215   : > { %2861 = vsinq.f32 %v968_v5  ;;  %v1274_v63 = vcvt.s32.f32 %v1267_v12  ;;  %v746_v61 = vshrl.u32 %v728_v58, %v744_v46  ;;  %v837_v59 = vadd.s32 536870912, %v836_v6 }
 0x216   : > { %v1069_v35 = vsel %vm986_vm5, %v1068_v37, %v1067_v25  ;;  %v1168_v33 = vand.u32 2147483647, %v1167_v23  ;;  %v1373_v15 = vadd.s32 127, %v1372_v45  ;;  %v1472_v49 = vsub.s32 32, %v4234_v43 }
 0x217   : > { %v1275_v8 = vmul.f32 %v1274_v63, %v1272_v19  ;;  %v745_v57 = vshll.u32 %v4147_v54, %v4207_v28  ;;  %v751_v60 = vor.u32 4788187, %v750_v51  ;;  %v4270_v11 = vshrl.u32 %v837_v59, 30 }
 0x218   : > { %v1170_v24 = vcvt.s32.f32 %v1163_v18  ;;  %v1368_v20 = vsub.s32 32, %v4242_v31  ;;  %v1456_v7 = vadd.s32 %v4097_v50, %v4103_v42  ;;  %v1478_v5 = vshll.u32 %v1477_v48, 23 }
 0x219   : > { %v4817_v25 = vsub.s32 2, %v4816_v3  ;;  %v1072_v38 = vsel %vm4251_vm6, %v4812_v55, %v1069_v35  ;;  %v747_v54 = vor.u32 %v746_v61, %v745_v57  ;;  %v839_v28 = vshll.u32 %v4270_v11, 30  ;;  %v4820_v61 = vld [vmem:[#allocation9_spill] sm:$0xff] }
 0x21a   : > { %v1171_v37 = vmul.f32 %v1170_v24, %v1168_v33  ;;  %v1352_v12 = vadd.s32 %v3969_v39, %v3982_v16  ;;  %v1374_v46 = vshll.u32 %v1373_v15, 23  ;;  %v1474_v4 = vshrl.u32 %v1456_v7, %v1472_v49  ;;  %v4819_v16 = vld [vmem:[#allocation17_spill] sm:$0xff] }
 0x21b   : > { %v4278_v56 = vrot.slane %v4818_v27, %v4817_v25  ;;  %v973_v50 = vadd.s32 3, %v969_v13  ;;  %v1276_v42 = vxor.u32 2147483648, %v1275_v8  ;;  %v752_v32 = vand.u32 2147483647, %v751_v60 }
 0x21c   : > { %v4290_v23 = vsub.s32 %v836_v6, %v839_v28  ;;  %v1071_v45 = vsel %vm986_vm5, %v1070_v22, %v3800_v41  ;;  %v1370_v0 = vshrl.u32 %v1352_v12, %v1368_v20  ;;  %v1473_v19 = vshll.u32 %v4176_v26, %v4234_v43 }
 0x21d   : > { %v1479_v39 = vor.u32 4788187, %v1478_v5  ;;  %2863 = vcosq.f32 %v1072_v38  ;;  %vm1194_vm8 = vcmp.lt.s32.totalorder %v4819_v16, 0  ;;  %v754_v44 = vcvt.s32.f32 %v747_v54 }
 0x21e   : > { %v842_v1 = vsub.s32 0, %v4290_v23  ;;  %v1172_v13 = vxor.u32 2147483648, %v1171_v37  ;;  %v1369_v58 = vshll.u32 %v4129_v9, %v4242_v31  ;;  %v1375_v51 = vor.u32 4788187, %v1374_v46  ;;  %v4821_v9 = vld [vmem:[#allocation15_spill] sm:$0xff] }
 0x21f   : > { %v1475_v6 = vor.u32 %v1474_v4, %v1473_v19  ;;  %v4301_v18 = vand.u32 3, %v973_v50  ;;  %v1277_v41 = vsel %vm1194_vm8, %v1276_v42, %v1275_v8  ;;  %v755_v22 = vmul.f32 %v754_v44, %v752_v32 }
 0x220   : > { %v2579_v26 = vmin.u32 %v842_v1, %v4290_v23  ;;  %v1073_v43 = vsel %vm4251_vm6, 0, %v1071_v45  ;;  %v1371_v48 = vor.u32 %v1370_v0, %v1369_v58  ;;  %v1480_v63 = vand.u32 2147483647, %v1479_v39 }
 0x221   : > { %vm674_vm1 = vcmp.lt.s32.totalorder %v4820_v61, 0  ;;  %v2860_v59 = vpop.eup %2859  ;;  %2865 = vsinq.f32 %v1072_v38  ;;  %vm1090_vm9 = vcmp.lt.s32.totalorder %v4821_v9, 0  ;;  %v4822_v31 = vand.u32 2147483647, %v4819_v16 }
 0x222   : > { %v4825_v33 = vand.u32 2147483647, %v4820_v61  ;;  %v844_v34 = vclz %v2579_v26  ;;  %v2862_v49 = vpop.eup %2861  ;;  %v1173_v8 = vsel %vm1090_vm9, %v1172_v13, %v1171_v37  ;;  %v1376_v60 = vand.u32 2147483647, %v1375_v51 }
 0x223   : > { %vm4312_vm2 = vcmp.le.f32.partialorder %v4822_v31, 0.7853982  ;;  %v1482_v24 = vcvt.s32.f32 %v1475_v6  ;;  %vm976_vm3 = vcmp.eq.s32.totalorder %v4301_v18, 0  ;;  %vm979_vm4 = vcmp.eq.s32.totalorder %v4301_v18, 2 }
 0x224   : > { %vm4318_vm10 = vcmp.le.f32.partialorder %v4825_v33, 0.7853982  ;;  %v1280_v57 = vsel %vm4312_vm2, %v4819_v16, %v1277_v41  ;;  %v1077_v20 = vadd.s32 3, %v1073_v43  ;;  %v756_v7 = vxor.u32 2147483648, %v755_v22 }
 0x225   : > { %v2580_v5 = vadd.s32 4294967294, %v844_v34  ;;  %v4828_v25 = vand.u32 2147483647, %v4821_v9  ;;  %v1278_v38 = vsub.s32 4, %v3978_v17  ;;  %v1378_v54 = vcvt.s32.f32 %v1371_v48 }
 0x226   : > { %v1483_v28 = vmul.f32 %v1482_v24, %v1480_v63  ;;  %v980_v37 = vxor.u32 2147483648, %v2860_v59  ;;  %2867 = vcosq.f32 %v1280_v57  ;;  %v1174_v46 = vsub.s32 4, %v3987_v36 }
 0x227   : > { %vm4331_vm7 = vcmp.le.f32.partialorder %v4828_v25, 0.7853982  ;;  %vm2581_vm15 = vcmp.lt.s32.totalorder %v2580_v5, 0  ;;  %2869 = vsinq.f32 %v1280_v57  ;;  %v1379_v4 = vmul.f32 %v1378_v54, %v1376_v60 }
 0x228   : > { %v1176_v12 = vsel %vm4331_vm7, %v4821_v9, %v1173_v8  ;;  %v847_v50 = vsel %vm2581_vm15, 0, %v2580_v5  ;;  %v757_v42 = vsel %vm674_vm1, %v756_v7, %v755_v22  ;;  %v832_v32 = vadd.s32 %v4217_v47, %v4215_v10 }
 0x229   : > { %v848_v45 = vsub.s32 32, %v847_v50  ;;  %v852_v0 = vsub.s32 4294967266, %v847_v50  ;;  %v977_v19 = vxor.u32 2147483648, %v2862_v49  ;;  %2871 = vcosq.f32 %v1176_v12 }
 0x22a   : > { %v1279_v39 = vsel %vm1194_vm8, %v1278_v38, %v3978_v17  ;;  %v1484_v44 = vxor.u32 2147483648, %v1483_v28  ;;  %2873 = vsinq.f32 %v1176_v12  ;;  %v849_v1 = vshll.u32 %v4290_v23, %v847_v50  ;;  %v2864_v51 = vpop.eup %2863 }
 0x22b   : > { %v850_v13 = vshrl.u32 %v832_v32, %v848_v45  ;;  %v853_v58 = vadd.s32 127, %v852_v0  ;;  %v4348_v6 = vand.u32 3, %v1077_v20  ;;  %v1175_v10 = vsel %vm1090_vm9, %v1174_v46, %v3987_v36 }
 0x22c   : > { %v1380_v47 = vxor.u32 2147483648, %v1379_v4  ;;  %v760_v41 = vsel %vm4318_vm10, %v4820_v61, %v757_v42  ;;  %v1281_v17 = vsel %vm4312_vm2, 0, %v1279_v39  ;;  %vm1402_vm11 = vcmp.lt.s32.totalorder %v3952_v2, 0 }
 0x22d   : > { %v851_v23 = vor.u32 %v850_v13, %v849_v1  ;;  %v854_v22 = vshll.u32 %v853_v58, 23  ;;  %v978_v26 = vsel %vm976_vm3, %v2860_v59, %v977_v19  ;;  %v981_v43 = vsel %vm979_vm4, %v980_v37, %v2862_v49 }
 0x22e   : > { %vm1298_vm12 = vcmp.lt.s32.totalorder %v3651_v52, 0  ;;  %v1485_v36 = vsel %vm1402_vm11, %v1484_v44, %v1483_v28  ;;  %v1084_v48 = vxor.u32 2147483648, %v2864_v51  ;;  %v1177_v63 = vsel %vm4331_vm7, 0, %v1175_v10  ;;  %v2866_v35 = vpop.eup %2865 }
 0x22f   : > { %2875 = vcosq.f32 %v760_v41  ;;  %v855_v31 = vor.u32 4788187, %v854_v22  ;;  %v1285_v33 = vadd.s32 3, %v1281_v17  ;;  %v1381_v34 = vsel %vm1298_vm12, %v1380_v47, %v1379_v4 }
 0x230   : > { %v4831_v59 = vand.u32 2147483647, %v3952_v2  ;;  %2877 = vsinq.f32 %v760_v41  ;;  %v758_v57 = vsub.s32 4, %v4132_v62  ;;  %v858_v24 = vcvt.s32.f32 %v851_v23 }
 0x231   : > { %v856_v60 = vand.u32 2147483647, %v855_v31  ;;  %vm975_vm0 = vcmp.lt.s32.totalorder %v4301_v18, 2  ;;  %vm1080_vm5 = vcmp.eq.s32.totalorder %v4348_v6, 0  ;;  %vm1083_vm14 = vcmp.eq.s32.totalorder %v4348_v6, 2 }
 0x232   : > { %vm4372_vm13 = vcmp.le.f32.partialorder %v4831_v59, 0.7853982  ;;  %v4834_v20 = vand.u32 2147483647, %v3651_v52  ;;  %v982_v5 = vsel %vm975_vm0, %v978_v26, %v981_v43  ;;  %v1382_v25 = vsub.s32 4, %v4090_v21 }
 0x233   : > { %v1488_v8 = vsel %vm4372_vm13, %v3952_v2, %v1485_v36  ;;  %v859_v38 = vmul.f32 %v858_v24, %v856_v60  ;;  %v2868_v54 = vpop.eup %2867  ;;  %v1081_v18 = vxor.u32 2147483648, %v2866_v35  ;;  %v1085_v28 = vsel %vm1083_vm14, %v1084_v48, %v2866_v35  ;;  %v4839_v24 = vld [vmem:[#allocation5_spill] sm:$0xff] }
 0x234   : > { %vm4385_vm6 = vcmp.le.f32.partialorder %v4834_v20, 0.7853982  ;;  %v1181_v37 = vadd.s32 3, %v1177_v63  ;;  %2879 = vcosq.f32 %v1488_v8  ;;  %v2870_v12 = vpop.eup %2869  ;;  %v1286_v46 = vand.u32 3, %v1285_v33 }
 0x235   : > { %v1384_v27 = vsel %vm4385_vm6, %v3651_v52, %v1381_v34  ;;  %2881 = vsinq.f32 %v1488_v8  ;;  %v759_v4 = vsel %vm674_vm1, %v758_v57, %v4132_v62  ;;  %v860_v50 = vxor.u32 2147483648, %v859_v38 }
 0x236   : > { %2883 = vcosq.f32 %v1384_v27  ;;  %v1486_v42 = vsub.s32 4, %v4158_v53  ;;  %vm778_vm8 = vcmp.lt.s32.totalorder %v4806_v40, 0  ;;  %v862_v32 = vsub.s32 4, %v4270_v11  ;;  %v2872_v45 = vpop.eup %2871 }
 0x237   : > { %v1383_v0 = vsel %vm1298_vm12, %v1382_v25, %v4090_v21  ;;  %2885 = vsinq.f32 %v1384_v27  ;;  %vm4404_vm9 = vcmp.le.f32.partialorder %v776_v14, 0.7853982  ;;  %v861_v62 = vsel %vm778_vm8, %v860_v50, %v859_v38  ;;  %v2874_v39 = vpop.eup %2873 }
 0x238   : > { %v1289_v44 = vxor.u32 2147483648, %v2870_v12  ;;  %v1292_v1 = vxor.u32 2147483648, %v2868_v54  ;;  %v761_v13 = vsel %vm4318_vm10, 0, %v759_v4  ;;  %v864_v21 = vsel %vm4404_vm9, %v4806_v40, %v861_v62 }
 0x239   : > { %vm1509_vm1 = vcmp.eq.s32.totalorder %v4278_v56, 1  ;;  %v1082_v14 = vsel %vm1080_vm5, %v2864_v51, %v1081_v18  ;;  %v1182_v58 = vand.u32 3, %v1181_v37  ;;  %vm1288_vm2 = vcmp.eq.s32.totalorder %v1286_v46, 0  ;;  %v4840_v37 = vld [vmem:[#allocation7_spill] sm:$0xff] }
 0x23a   : > { %2887 = vcosq.f32 %v864_v21  ;;  %v1385_v10 = vsel %vm4385_vm6, 0, %v1383_v0  ;;  %v1487_v15 = vsel %vm1402_vm11, %v1486_v42, %v4158_v53  ;;  %v863_v47 = vsel %vm778_vm8, %v862_v32, %v4270_v11  ;;  %v4841_v42 = vld [vmem:[#allocation16_spill] sm:$0xff] }
 0x23b   : > { %2889 = vsinq.f32 %v864_v21  ;;  %v1185_v41 = vxor.u32 2147483648, %v2874_v39  ;;  %v1188_v17 = vxor.u32 2147483648, %v2872_v45  ;;  %vm1291_vm10 = vcmp.eq.s32.totalorder %v1286_v46, 2 }
 0x23c   : > { %v765_v23 = vadd.s32 3, %v761_v13  ;;  %v2876_v51 = vpop.eup %2875  ;;  %vm972_vm3 = vweird.f32 %v4802_v30  ;;  %vm1079_vm4 = vcmp.lt.s32.totalorder %v4348_v6, 2  ;;  %v1290_v22 = vsel %vm1288_vm2, %v2868_v54, %v1289_v44 }
 0x23d   : > { %v1293_v26 = vsel %vm1291_vm10, %v1292_v1, %v2870_v12  ;;  %v2878_v43 = vpop.eup %2877  ;;  %v983_v36 = vsel %vm972_vm3, nan, %v982_v5  ;;  %v1389_v48 = vadd.s32 3, %v1385_v10  ;;  %v1489_v53 = vsel %vm4372_vm13, 0, %v1487_v15 }
 0x23e   : > { %v865_v11 = vsel %vm4404_vm9, 0, %v863_v47  ;;  %v1086_v63 = vsel %vm1079_vm4, %v1082_v14, %v1085_v28  ;;  %vm1184_vm7 = vcmp.eq.s32.totalorder %v1182_v58, 0  ;;  %vm1187_vm15 = vcmp.eq.s32.totalorder %v1182_v58, 2 }
 0x23f   : > { %vm1287_vm11 = vcmp.lt.s32.totalorder %v1286_v46, 2  ;;  %v1186_v31 = vsel %vm1184_vm7, %v2872_v45, %v1185_v41  ;;  %v1189_v35 = vsel %vm1187_vm15, %v1188_v17, %v2874_v39  ;;  %v766_v33 = vand.u32 3, %v765_v23  ;;  %v4842_v23 = vld [vmem:[#allocation14_spill] sm:$0xff] }
 0x240   : > { %v1294_v30 = vsel %vm1287_vm11, %v1290_v22, %v1293_v26  ;;  %v1493_v6 = vadd.s32 3, %v1489_v53  ;;  %v769_v34 = vxor.u32 2147483648, %v2878_v43  ;;  %v772_v59 = vxor.u32 2147483648, %v2876_v51  ;;  %v4844_v22 = vld [vmem:[#allocation4_spill] sm:$0xff] }
 0x241   : > { %v869_v8 = vadd.s32 3, %v865_v11  ;;  %v2880_v57 = vpop.eup %2879  ;;  %vm1076_vm12 = vweird.f32 %v4812_v55  ;;  %vm1180_vm13 = vweird.f32 %v4821_v9  ;;  %v1390_v49 = vand.u32 3, %v1389_v48 }
 0x242   : > { %vm764_vm0 = vweird.f32 %v4820_v61  ;;  %v2882_v60 = vpop.eup %2881  ;;  %v1512_v20 = vsel %vm1509_vm1, %v4839_v24, %v983_v36  ;;  %v1087_v7 = vsel %vm1076_vm12, nan, %v1086_v63  ;;  %vm1183_vm5 = vcmp.lt.s32.totalorder %v1182_v58, 2  ;;  %v4843_v61 = vld [vmem:[#allocation2_spill] sm:$0xff] }
 0x243   : > { %vm1284_vm14 = vweird.f32 %v4819_v16  ;;  %v2884_v5 = vpop.eup %2883  ;;  %v1190_v25 = vsel %vm1183_vm5, %v1186_v31, %v1189_v35  ;;  %vm768_vm6 = vcmp.eq.s32.totalorder %v766_v33, 0  ;;  %vm771_vm8 = vcmp.eq.s32.totalorder %v766_v33, 2  ;;  %v4845_v31 = vld [vmem:[#allocation21_spill] sm:$0xff] }
 0x244   : > { %v1295_v27 = vsel %vm1284_vm14, nan, %v1294_v30  ;;  %v2886_v55 = vpop.eup %2885  ;;  %v1494_v38 = vand.u32 3, %v1493_v6  ;;  %v770_v54 = vsel %vm768_vm6, %v2876_v51, %v769_v34  ;;  %v773_v18 = vsel %vm771_vm8, %v772_v59, %v2878_v43 }
 0x245   : > { %v870_v28 = vand.u32 3, %v869_v8  ;;  %v1513_v12 = vsel %vm1509_vm1, %v4840_v37, %v1087_v7  ;;  %vm1392_vm9 = vcmp.eq.s32.totalorder %v1390_v49, 0  ;;  %v1497_v46 = vxor.u32 2147483648, %v2882_v60  ;;  %v2852_v37 = vld [vmem:[%s4713_s3 + $0x10] sm:$0xff]  }
 0x246   : > { %v1500_v4 = vxor.u32 2147483648, %v2880_v57  ;;  %v1191_v16 = vsel %vm1180_vm13, nan, %v1190_v25  ;;  %v1515_v32 = vsel %vm1509_vm1, %v4841_v42, %v1295_v27  ;;  %vm1395_vm2 = vcmp.eq.s32.totalorder %v1390_v49, 2 }
 0x247   : > { %v2888_v50 = vpop.eup %2887  ;;  %vm767_vm10 = vcmp.lt.s32.totalorder %v766_v33, 2  ;;  %v1393_v0 = vxor.u32 2147483648, %v2886_v55  ;;  %v1396_v19 = vxor.u32 2147483648, %v2884_v5  ;;  %vm1496_vm3 = vcmp.eq.s32.totalorder %v1494_v38, 0 }
 0x248   : > { %v2890_v45 = vpop.eup %2889  ;;  %v774_v62 = vsel %vm767_vm10, %v770_v54, %v773_v18  ;;  %v876_v39 = vxor.u32 2147483648, %v2888_v50  ;;  %vm1499_vm4 = vcmp.eq.s32.totalorder %v1494_v38, 2  ;;  %vm875_vm7 = vcmp.eq.s32.totalorder %v870_v28, 2 }
 0x249   : > { %v873_v44 = vxor.u32 2147483648, %v2890_v45  ;;  %v1498_v1 = vsel %vm1496_vm3, %v2880_v57, %v1497_v46  ;;  %v1501_v13 = vsel %vm1499_vm4, %v1500_v4, %v2882_v60  ;;  %vm872_vm15 = vcmp.eq.s32.totalorder %v870_v28, 0  ;;  %v4489_v4 = vld [vmem:[%s4714_s4] sm:$0xff] }
 0x24a   : > { %v877_v9 = vsel %vm875_vm7, %v876_v39, %v2890_v45  ;;  %v775_v21 = vsel %vm764_vm0, nan, %v774_v62  ;;  %vm868_vm11 = vweird.f32 %v4806_v40  ;;  %vm871_vm12 = vcmp.lt.s32.totalorder %v870_v28, 2  ;;  %v2851_v28 = vld [vmem:[%s4713_s3 + $0x18] sm:$0xff]  }
 0x24b   : > { %v874_v14 = vsel %vm872_vm15, %v2888_v50, %v873_v44  ;;  %v1394_v58 = vsel %vm1392_vm9, %v2884_v5, %v1393_v0  ;;  %v1397_v10 = vsel %vm1395_vm2, %v1396_v19, %v2886_v55  ;;  %vm1495_vm13 = vcmp.lt.s32.totalorder %v1494_v38, 2 }
 0x24c   : > { %v878_v15 = vsel %vm871_vm12, %v874_v14, %v877_v9  ;;  %v1519_v47 = vpack.c.bf16 %v1513_v12, %v1512_v20  ;;  %vm1391_vm5 = vcmp.lt.s32.totalorder %v1390_v49, 2  ;;  %v1502_v41 = vsel %vm1495_vm13, %v1498_v1, %v1501_v13 }
 0x24d   : > { %v879_v17 = vsel %vm868_vm11, nan, %v878_v15  ;;  %v1514_v51 = vsel %vm1509_vm1, %v4842_v23, %v1191_v16  ;;  %v1510_v40 = vsel %vm1509_vm1, %v4843_v61, %v775_v21  ;;  %vm1554_vm0 = vcmask 523264  }
 0x24e   : > { %v1511_v26 = vsel %vm1509_vm1, %v4844_v22, %v879_v17  ;;  %v1520_v43 = vpack.c.bf16 %v1515_v32, %v1514_v51  ;;  %v1398_v36 = vsel %vm1391_vm5, %v1394_v58, %v1397_v10  ;;  %vm1492_vm14 = vweird.f32 %v3952_v2  ;;  %v2849_v2 = vld [vmem:[%s4713_s3 + $0x8] sm:$0xff]  }
 0x24f   : > { %v1518_v48 = vpack.c.bf16 %v1511_v26, %v1510_v40  ;;  %v1503_v53 = vsel %vm1492_vm14, nan, %v1502_v41  ;;  %vm1388_vm6 = vweird.f32 %v3651_v52  ;;  %v2850_v52 = vld [vmem:[%s4713_s3] sm:$0xff]   ;;  %2724 = vmatprep.subr.bf16.mxu1 %v2849_v2  ;;  %v1740_v12 = vsub.s32 3, %v4816_v3 }
 0x250   : > { %v1399_v11 = vsel %vm1388_vm6, nan, %v1398_v36  ;;  %v1517_v63 = vsel %vm1509_vm1, %v3915_v29, %v1503_v53  ;;  %2725 = vmatpush3.bf16.msra.mxu1 %v2849_v2  ;;  %v2853_v36 = vld [vmem:[%s4713_s3 + $0x28] sm:$0xff]  }
 0x251   : > { %2716 = vmatprep.mubr.msk.bf16.mxu0 %vm1554_vm0, %v1518_v48  ;;  %v1516_v35 = vsel %vm1509_vm1, %v4845_v31, %v1399_v11  ;;  %2726 = vmatprep.subr.bf16.mxu1 %v2850_v52  ;;  %vm1660_vm1 = vcmask 261120   ;;  %v1741_v50 = vrot.slane %v4489_v4, %v1740_v12  ;;  %v2854_v48 = vld [vmem:[%s4713_s3 + $0x20] sm:$0xff]  }
 0x252   : > { %2717 = vmatmul.mubr.msk.bf16.vlgmr.msra.gmra.mxu0 %vm1554_vm0, %v1519_v47  ;;  %v1521_v30 = vpack.c.bf16 %v1517_v63, %v1516_v35  ;;  %2748 = vmatprep.subr.bf16.mxu0 %v2853_v36 }
 0x253   : > { %2720 = vmatprep.mubr.msk.bf16.mxu0 %vm1554_vm0, %v1520_v43  ;;  %2749 = vmatpush3.bf16.msra.mxu0 %v2853_v36 }
 0x254   : > { %2727 = vmatpush3.bf16.msra.mxu1 %v2850_v52  ;;  %2750 = vmatprep.subr.bf16.mxu0 %v2854_v48 }
 0x255   : > { %2736 = vmatprep.subr.bf16.mxu1 %v2851_v28 }
 0x257   : > { %2751 = vmatpush3.bf16.msra.mxu0 %v2854_v48 }
 0x25a   : > { %2721 = vmatmul.mubr.msk.bf16.gmra.mxu0 %vm1554_vm0, %v1521_v30 }
 0x312   : > { %v2718_v29 = vpop.f32.mrf.mxu0 }
 0x313   : > { %v1634_v57 = vmax.f32 %v2718_v29, 0.0 }
 0x314   : > { %v1601_v33 = vpop.f32.mrf.mxu0 }
 0x315   : > { %1864 = vrot.lane.b32.xlu0 %v1601_v33, %s2982_s30  ;;  %v1632_v59 = vmax.f32 %v1601_v33, 0.0 }
 0x316   : > { %v2719_v56 = vpop.f32.mrf.mxu0 }
 0x317   : > { %v1635_v6 = vmax.f32 %v2719_v56, 0.0 }
 0x318   : > { %v1604_v34 = vpop.f32.mrf.mxu0 }
 0x319   : > { %1868 = vrot.lane.b32.xlu0 %v2718_v29, %s2982_s30  ;;  %1866 = vrot.lane.b32.xlu1 %v1604_v34, %s2982_s30  ;;  %v1633_v8 = vmax.f32 %v1604_v34, 0.0  ;;  %v1645_v24 = vpack.c.bf16 %v1635_v6, %v1634_v57 }
 0x31a   : > { %v2722_v49 = vpop.f32.mrf.mxu0 }
 0x31b   : > { %v1644_v60 = vpack.c.bf16 %v1633_v8, %v1632_v59  ;;  %v1638_v38 = vmax.f32 %v2722_v49, 0.0 }
 0x31c   : > { %v1617_v20 = vpop.f32.mrf.mxu0 }
 0x31d   : > { %1870 = vrot.lane.b32.xlu1 %v2719_v56, %s2982_s30  ;;  %2728 = vmatprep.mubr.msk.bf16.mxu1 %vm1660_vm1, %v1644_v60  ;;  %v1636_v27 = vmax.f32 %v1617_v20, 0.0 }
 0x31e   : > { %2729 = vmatmul.mubr.msk.bf16.vlgmr.msra.gmra.mxu1 %vm1660_vm1, %v1645_v24  ;;  %1872 = vrot.lane.b32.xlu0 %v1617_v20, %s2982_s30  ;;  %v2723_v7 = vpop.f32.mrf.mxu0 }
 0x31f   : > { %v1639_v5 = vmax.f32 %v2723_v7, 0.0  ;;  %2737 = vmatpush3.bf16.msra.mxu1 %v2851_v28 }
 0x320   : > { %v1620_v25 = vpop.f32.mrf.mxu0  ;;  %2738 = vmatprep.subr.bf16.mxu1 %v2852_v37 }
 0x321   : > { %v1637_v55 = vmax.f32 %v1620_v25, 0.0  ;;  %1874 = vrot.lane.b32.xlu1 %v1620_v25, %s2982_s30  ;;  %v1647_v18 = vpack.c.bf16 %v1639_v5, %v1638_v38 }
 0x322   : > { %1876 = vrot.lane.b32.xlu0 %v2722_v49, %s2982_s30 }
 0x323   : > { %v1646_v54 = vpack.c.bf16 %v1637_v55, %v1636_v27  ;;  %2739 = vmatpush3.bf16.msra.mxu1 %v2852_v37 }
 0x325   : > { %1878 = vrot.lane.b32.xlu1 %v2723_v7, %s2982_s30  ;;  %2732 = vmatprep.mubr.msk.bf16.mxu1 %vm1660_vm1, %v1646_v54  ;;  %s4681_s30 = scalar_lea.vmem %s4715_s5, %s3023_s21 }
 0x326   : > { %2248 = vrot.lane.b32.xlu0 %v1601_v33, %s2983_s6  ;;  %2733 = vmatmul.mubr.msk.bf16.gmra.mxu1 %vm1660_vm1, %v1647_v18 }
 0x329   : > { %2250 = vrot.lane.b32.xlu1 %v1604_v34, %s2983_s6 }
 0x32a   : > { %2252 = vrot.lane.b32.xlu0 %v2718_v29, %s2983_s6 }
 0x32d   : > { %2254 = vrot.lane.b32.xlu1 %v2719_v56, %s2983_s6 }
 0x32e   : > { %2256 = vrot.lane.b32.xlu0 %v1617_v20, %s2983_s6 }
 0x331   : > { %2258 = vrot.lane.b32.xlu1 %v1620_v25, %s2983_s6 }
 0x332   : > { %2260 = vrot.lane.b32.xlu0 %v2722_v49, %s2983_s6 }
 0x335   : > { %2262 = vrot.lane.b32.xlu1 %v2723_v7, %s2983_s6 }
 0x387   : > { %v1865_v11 = vpop.permute.xlu0 %1864 }
 0x38b   : > { %v1867_v53 = vpop.permute.xlu1 %1866  ;;  %v1869_v30 = vpop.permute.xlu0 %1868 }
 0x38f   : > { %v1871_v31 = vpop.permute.xlu1 %1870 }
 0x390   : > { %v1873_v34 = vpop.permute.xlu0 %1872 }
 0x393   : > { %v1875_v33 = vpop.permute.xlu1 %1874 }
 0x394   : > { %v1877_v55 = vpop.permute.xlu0 %1876 }
 0x397   : > { %v1879_v5 = vpop.permute.xlu1 %1878 }
 0x3de   : > { %v2730_v46 = vpop.f32.mrf.mxu1 }
 0x3df   : > { %v1744_v0 = vadd.f32 %v2730_v46, %v1741_v50 }
 0x3e0   : > { %v1707_v16 = vpop.f32.mrf.mxu1 }
 0x3e1   : > { %v1742_v32 = vadd.f32 %v1741_v50, %v1707_v16  ;;  %v1752_v9 = vmax.f32 %v1744_v0, 0.0  ;;  %v2856_v0 = vld [vmem:[%s4713_s3 + $0x30] sm:$0xff]  }
 0x3e2   : > { %v2731_v42 = vpop.f32.mrf.mxu1 }
 0x3e3   : > { %v1745_v45 = vadd.f32 %v2731_v42, %v1741_v50  ;;  %v1750_v1 = vmax.f32 %v1742_v32, 0.0 }
 0x3e4   : > { %v1710_v19 = vpop.f32.mrf.mxu1 }
 0x3e5   : > { %v1743_v62 = vadd.f32 %v1741_v50, %v1710_v19  ;;  %v1753_v39 = vmax.f32 %v1745_v45, 0.0  ;;  %v2855_v45 = vld [vmem:[%s4713_s3 + $0x38] sm:$0xff]   ;;  %v1915_v19 = vsub.s32 4, %v4816_v3 }
 0x3e6   : > { %v2734_v44 = vpop.f32.mrf.mxu1  ;;  %2760 = vmatprep.subr.bf16.mxu1 %v2855_v45 }
 0x3e7   : > { %v1751_v13 = vmax.f32 %v1743_v62, 0.0  ;;  %v1764_v58 = vpack.c.bf16 %v1753_v39, %v1752_v9  ;;  %v1748_v41 = vadd.f32 %v2734_v44, %v1741_v50  ;;  %v1916_v62 = vrot.slane %v4489_v4, %v1915_v19 }
 0x3e8   : > { %v1723_v21 = vpop.f32.mrf.mxu1 }
 0x3e9   : > { %v1763_v14 = vpack.c.bf16 %v1751_v13, %v1750_v1  ;;  %v1746_v15 = vadd.f32 %v1741_v50, %v1723_v21  ;;  %v1756_v22 = vmax.f32 %v1748_v41, 0.0 }
 0x3ea   : > { %v2735_v10 = vpop.f32.mrf.mxu1 }
 0x3eb   : > { %2740 = vmatprep.mubr.msk.bf16.mxu1 %vm1660_vm1, %v1763_v14  ;;  %v1749_v47 = vadd.f32 %v2735_v10, %v1741_v50  ;;  %v1754_v61 = vmax.f32 %v1746_v15, 0.0 }
 0x3ec   : > { %2741 = vmatmul.mubr.msk.bf16.vlgmr.msra.gmra.mxu1 %vm1660_vm1, %v1764_v58  ;;  %v1726_v17 = vpop.f32.mrf.mxu1 }
 0x3ed   : > { %v1747_v23 = vadd.f32 %v1741_v50, %v1726_v17  ;;  %v1757_v51 = vmax.f32 %v1749_v47, 0.0  ;;  %2761 = vmatpush3.bf16.msra.mxu1 %v2855_v45 }
 0x3ee   : > { %2762 = vmatprep.subr.bf16.mxu1 %v2856_v0 }
 0x3ef   : > { %v1755_v40 = vmax.f32 %v1747_v23, 0.0  ;;  %v1766_v43 = vpack.c.bf16 %v1757_v51, %v1756_v22 }
 0x3f1   : > { %v1765_v26 = vpack.c.bf16 %v1755_v40, %v1754_v61  ;;  %2763 = vmatpush3.bf16.msra.mxu1 %v2856_v0 }
 0x3f3   : > { %2744 = vmatprep.mubr.msk.bf16.mxu1 %vm1660_vm1, %v1765_v26 }
 0x3f4   : > { %2745 = vmatmul.mubr.msk.bf16.gmra.mxu1 %vm1660_vm1, %v1766_v43 }
 0x4ac   : > { %v2742_v63 = vpop.f32.mrf.mxu1 }
 0x4ad   : > { %v1890_v56 = vadd.f32 %v2742_v63, %v1869_v30 }
 0x4ae   : > { %v1825_v35 = vpop.f32.mrf.mxu1 }
 0x4af   : > { %v1888_v52 = vadd.f32 %v1865_v11, %v1825_v35  ;;  %v1898_v24 = vmax.f32 %v1890_v56, 0.0 }
 0x4b0   : > { %v2743_v2 = vpop.f32.mrf.mxu1 }
 0x4b1   : > { %v1891_v29 = vadd.f32 %v2743_v2, %v1871_v31  ;;  %v1896_v49 = vmax.f32 %v1888_v52, 0.0 }
 0x4b2   : > { %v1828_v6 = vpop.f32.mrf.mxu1 }
 0x4b3   : > { %v1889_v59 = vadd.f32 %v1867_v53, %v1828_v6  ;;  %v1899_v8 = vmax.f32 %v1891_v29, 0.0 }
 0x4b4   : > { %v2746_v57 = vpop.f32.mrf.mxu1 }
 0x4b5   : > { %v1897_v60 = vmax.f32 %v1889_v59, 0.0  ;;  %v1910_v25 = vpack.c.bf16 %v1899_v8, %v1898_v24  ;;  %v1894_v18 = vadd.f32 %v2746_v57, %v1877_v55 }
 0x4b6   : > { %v1841_v20 = vpop.f32.mrf.mxu1 }
 0x4b7   : > { %v1909_v7 = vpack.c.bf16 %v1897_v60, %v1896_v49  ;;  %v1892_v38 = vadd.f32 %v1873_v34, %v1841_v20  ;;  %v1902_v16 = vmax.f32 %v1894_v18, 0.0 }
 0x4b8   : > { %v2747_v27 = vpop.f32.mrf.mxu1 }
 0x4b9   : > { %2752 = vmatprep.mubr.msk.bf16.mxu0 %vm1660_vm1, %v1909_v7  ;;  %v1895_v54 = vadd.f32 %v2747_v27, %v1879_v5  ;;  %v1900_v46 = vmax.f32 %v1892_v38, 0.0 }
 0x4ba   : > { %2753 = vmatmul.mubr.msk.bf16.vlgmr.msra.gmra.mxu0 %vm1660_vm1, %v1910_v25  ;;  %v1844_v28 = vpop.f32.mrf.mxu1 }
 0x4bb   : > { %v1893_v37 = vadd.f32 %v1875_v33, %v1844_v28  ;;  %v1903_v12 = vmax.f32 %v1895_v54, 0.0 }
 0x4bd   : > { %v1901_v50 = vmax.f32 %v1893_v37, 0.0  ;;  %v1912_v32 = vpack.c.bf16 %v1903_v12, %v1902_v16 }
 0x4bf   : > { %v1911_v42 = vpack.c.bf16 %v1901_v50, %v1900_v46 }
 0x4c1   : > { %2756 = vmatprep.mubr.msk.bf16.mxu0 %vm1660_vm1, %v1911_v42 }
 0x4c2   : > { %2757 = vmatmul.mubr.msk.bf16.gmra.mxu0 %vm1660_vm1, %v1912_v32 }
 0x57a   : > { %v2754_v39 = vpop.f32.mrf.mxu0 }
 0x57b   : > { %v4514_v44 = vadd.f32 %v2754_v39, %v1916_v62 }
 0x57c   : > { %v1975_v1 = vpop.f32.mrf.mxu0 }
 0x57d   : > { %v2032_v13 = vand.u32 2147483647, %v4514_v44  ;;  %v4517_v9 = vadd.f32 %v1975_v1, %v1916_v62  ;;  %v2008_v11 = vmax.f32 %v4514_v44, 0.0  ;;  %vm2016_vm8 = vcmp.ne.f32.partialorder %v4514_v44, %v4514_v44 }
 0x57e   : > { %v2755_v21 = vpop.f32.mrf.mxu0 }
 0x57f   : > { %v2040_v14 = vsub.f32 0.0, %v2032_v13  ;;  %v2030_v58 = vand.u32 2147483647, %v4517_v9  ;;  %v4520_v10 = vadd.f32 %v2755_v21, %v1916_v62  ;;  %v2006_v26 = vmax.f32 %v4517_v9, 0.0 }
 0x580   : > { %v1978_v15 = vpop.f32.mrf.mxu0  ;;  %vm2014_vm2 = vcmp.ne.f32.partialorder %v4517_v9, %v4517_v9 }
 0x581   : > { %v2050_v47 = vmul.f32 1.442695, %v2040_v14  ;;  %v2038_v41 = vsub.f32 0.0, %v2030_v58  ;;  %v2033_v17 = vand.u32 2147483647, %v4520_v10  ;;  %v4523_v23 = vadd.f32 %v1978_v15, %v1916_v62 }
 0x582   : > { %v2758_v51 = vpop.f32.mrf.mxu0  ;;  %v2009_v40 = vmax.f32 %v4520_v10, 0.0  ;;  %vm2017_vm3 = vcmp.ne.f32.partialorder %v4520_v10, %v4520_v10 }
 0x583   : > { %2891 = vpow2.f32 %v2050_v47  ;;  %v2046_v61 = vmul.f32 1.442695, %v2038_v41  ;;  %v2041_v22 = vsub.f32 0.0, %v2033_v17  ;;  %v2007_v43 = vmax.f32 %v4523_v23, 0.0 }
 0x584   : > { %v2031_v36 = vand.u32 2147483647, %v4523_v23  ;;  %v4529_v48 = vadd.f32 %v2758_v51, %v1916_v62  ;;  %v1991_v53 = vpop.f32.mrf.mxu0  ;;  %v2156_v29 = vpack.c.bf16 %v2009_v40, %v2008_v11  ;;  %vm2015_vm12 = vcmp.ne.f32.partialorder %v4523_v23, %v4523_v23 }
 0x585   : > { %2893 = vpow2.f32 %v2046_v61  ;;  %v2052_v63 = vmul.f32 1.442695, %v2041_v22  ;;  %v4532_v31 = vadd.f32 %v1991_v53, %v1916_v62  ;;  %v2155_v30 = vpack.c.bf16 %v2007_v43, %v2006_v26 }
 0x586   : > { %v2039_v35 = vsub.f32 0.0, %v2031_v36  ;;  %v2036_v2 = vand.u32 2147483647, %v4529_v48  ;;  %v2759_v52 = vpop.f32.mrf.mxu0  ;;  %v2012_v55 = vmax.f32 %v4529_v48, 0.0  ;;  %vm2020_vm6 = vcmp.ne.f32.partialorder %v4529_v48, %v4529_v48 }
 0x587   : > { %2895 = vpow2.f32 %v2052_v63  ;;  %v2034_v33 = vand.u32 2147483647, %v4532_v31  ;;  %v4544_v56 = vadd.f32 %v2759_v52, %v1916_v62  ;;  %2764 = vmatprep.mubr.msk.bf16.mxu1 %vm1660_vm1, %v2155_v30  ;;  %v2010_v24 = vmax.f32 %v4532_v31, 0.0 }
 0x588   : > { %v2048_v6 = vmul.f32 1.442695, %v2039_v35  ;;  %v2044_v34 = vsub.f32 0.0, %v2036_v2  ;;  %v1994_v59 = vpop.f32.mrf.mxu0  ;;  %2765 = vmatmul.mubr.msk.bf16.vlgmr.msra.gmra.mxu1 %vm1660_vm1, %v2156_v29  ;;  %vm2018_vm13 = vcmp.ne.f32.partialorder %v4532_v31, %v4532_v31 }
 0x589   : > { %v2042_v8 = vsub.f32 0.0, %v2034_v33  ;;  %v2037_v57 = vand.u32 2147483647, %v4544_v56  ;;  %v4549_v49 = vadd.f32 %v1994_v59, %v1916_v62  ;;  %v2013_v20 = vmax.f32 %v4544_v56, 0.0 }
 0x58a   : > { %2897 = vpow2.f32 %v2048_v6  ;;  %v2058_v60 = vmul.f32 1.442695, %v2044_v34 }
 0x58b   : > { %v2054_v7 = vmul.f32 1.442695, %v2042_v8  ;;  %v2045_v5 = vsub.f32 0.0, %v2037_v57  ;;  %v2011_v25 = vmax.f32 %v4549_v49, 0.0  ;;  %v2035_v27 = vand.u32 2147483647, %v4549_v49 }
 0x58c   : > { %2899 = vpow2.f32 %v2058_v60  ;;  %v2158_v37 = vpack.c.bf16 %v2013_v20, %v2012_v55  ;;  %vm2019_vm14 = vcmp.ne.f32.partialorder %v4549_v49, %v4549_v49 }
 0x58d   : > { %2901 = vpow2.f32 %v2054_v7  ;;  %v2060_v38 = vmul.f32 1.442695, %v2045_v5  ;;  %v2043_v54 = vsub.f32 0.0, %v2035_v27  ;;  %v2157_v18 = vpack.c.bf16 %v2011_v25, %v2010_v24 }
 0x58f   : > { %2903 = vpow2.f32 %v2060_v38  ;;  %v2056_v28 = vmul.f32 1.442695, %v2043_v54  ;;  %2768 = vmatprep.mubr.msk.bf16.mxu1 %vm1660_vm1, %v2157_v18 }
 0x590   : > { %v2892_v12 = vpop.eup %2891  ;;  %2769 = vmatmul.mubr.msk.bf16.gmra.mxu1 %vm1660_vm1, %v2158_v37 }
 0x591   : > { %v2080_v46 = vadd.f32 1.0, %v2892_v12  ;;  %2905 = vpow2.f32 %v2056_v28  ;;  %v2083_v0 = vmul.f32 -0.5, %v2892_v12  ;;  %v2086_v41 = vand.u32 2147483647, %v2892_v12 }
 0x592   : > { %v2894_v50 = vpop.eup %2893 }
 0x593   : > { %2907 = vlog2.f32 %v2080_v46  ;;  %v2062_v16 = vadd.f32 1.0, %v2894_v50  ;;  %v2065_v13 = vmul.f32 -0.5, %v2894_v50  ;;  %v2084_v58 = vadd.f32 1.0, %v2083_v0 }
 0x594   : > { %v2896_v42 = vpop.eup %2895  ;;  %v2068_v61 = vand.u32 2147483647, %v2894_v50  ;;  %vm2087_vm9 = vcmp.lt.f32.partialorder %v2086_v41, 0.0004427343 }
 0x595   : > { %v2089_v32 = vadd.f32 1.0, %v2896_v42  ;;  %2909 = vlog2.f32 %v2062_v16  ;;  %v2092_v15 = vmul.f32 -0.5, %v2896_v42  ;;  %v2066_v51 = vadd.f32 1.0, %v2065_v13 }
 0x596   : > { %v2085_v53 = vmul.f32 %v2892_v12, %v2084_v58  ;;  %v2095_v29 = vand.u32 2147483647, %v2896_v42  ;;  %vm4584_vm10 = vcmp.lt.f32.partialorder %v2068_v61, 0.0004427343 }
 0x597   : > { %v4566_v45 = vpop.eup %2897  ;;  %2911 = vlog2.f32 %v2089_v32  ;;  %v2093_v63 = vadd.f32 1.0, %v2092_v15  ;;  %v2067_v34 = vmul.f32 %v2894_v50, %v2066_v51 }
 0x598   : > { %v2071_v19 = vadd.f32 1.0, %v4566_v45  ;;  %v2074_v35 = vmul.f32 -0.5, %v4566_v45  ;;  %v2077_v8 = vand.u32 2147483647, %v4566_v45  ;;  %vm2096_vm4 = vcmp.lt.f32.partialorder %v2095_v29, 0.0004427343 }
 0x599   : > { %v4569_v62 = vpop.eup %2899  ;;  %v2094_v7 = vmul.f32 %v2896_v42, %v2093_v63 }
 0x59a   : > { %v2902_v39 = vpop.eup %2901  ;;  %2913 = vlog2.f32 %v2071_v19  ;;  %v2116_v1 = vadd.f32 1.0, %v4569_v62  ;;  %v2119_v52 = vmul.f32 -0.5, %v4569_v62  ;;  %v2075_v27 = vadd.f32 1.0, %v2074_v35 }
 0x59b   : > { %v2098_v21 = vadd.f32 1.0, %v2902_v39  ;;  %v2101_v2 = vmul.f32 -0.5, %v2902_v39  ;;  %v2104_v18 = vand.u32 2147483647, %v2902_v39  ;;  %v2122_v19 = vand.u32 2147483647, %v4569_v62 }
 0x59c   : > { %v4572_v14 = vpop.eup %2903  ;;  %2915 = vlog2.f32 %v2116_v1  ;;  %v2120_v28 = vadd.f32 1.0, %v2119_v52  ;;  %v2076_v0 = vmul.f32 %v4566_v45, %v2075_v27  ;;  %vm2078_vm7 = vcmp.lt.f32.partialorder %v2077_v8, 0.0004427343 }
 0x59d   : > { %2917 = vlog2.f32 %v2098_v21  ;;  %v2125_v17 = vadd.f32 1.0, %v4572_v14  ;;  %v2102_v54 = vadd.f32 1.0, %v2101_v2  ;;  %v2128_v42 = vmul.f32 -0.5, %v4572_v14 }
 0x59e   : > { %v4574_v47 = vpop.eup %2905  ;;  %vm4608_vm15 = vcmp.lt.f32.partialorder %v2104_v18, 0.0004427343  ;;  %vm4626_vm11 = vcmp.lt.f32.partialorder %v2122_v19, 0.0004427343 }
 0x59f   : > { %v2107_v22 = vadd.f32 1.0, %v4574_v47  ;;  %2919 = vlog2.f32 %v2125_v17  ;;  %v2110_v16 = vmul.f32 -0.5, %v4574_v47  ;;  %v2103_v13 = vmul.f32 %v2902_v39, %v2102_v54 }
 0x5a0   : > { %v2908_v36 = vpop.eup %2907  ;;  %v2129_v51 = vadd.f32 1.0, %v2128_v42  ;;  %v2113_v61 = vand.u32 2147483647, %v4574_v47 }
 0x5a1   : > { %v2082_v30 = vmul.f32 0.6931472, %v2908_v36  ;;  %2921 = vlog2.f32 %v2107_v22  ;;  %v2111_v17 = vadd.f32 1.0, %v2110_v16 }
 0x5a2   : > { %v2910_v33 = vpop.eup %2909  ;;  %v2130_v29 = vmul.f32 %v4572_v14, %v2129_v51  ;;  %vm2114_vm5 = vcmp.lt.f32.partialorder %v2113_v61, 0.0004427343 }
 0x5a3   : > { %v2088_v6 = vsel %vm2087_vm9, %v2085_v53, %v2082_v30  ;;  %v2064_v5 = vmul.f32 0.6931472, %v2910_v33  ;;  %v2112_v52 = vmul.f32 %v4574_v47, %v2111_v17  ;;  %v2249_v47 = vpop.permute.xlu0 %2248  ;;  %v2388_v17 = vsub.s32 5, %v4816_v3 }
 0x5a4   : > { %v2912_v57 = vpop.eup %2911  ;;  %v2136_v60 = vadd.f32 %v2088_v6, %v2008_v11  ;;  %vm4852_vm9 = vcmask 23552  }
 0x5a5   : > { %v2091_v38 = vmul.f32 0.6931472, %v2912_v57  ;;  %v2070_v12 = vsel %vm4584_vm10, %v2067_v34, %v2064_v5  ;;  %v2389_v51 = vrot.slane %v4489_v4, %v2388_v17 }
 0x5a6   : > { %v2144_v37 = vsel %vm2016_vm8, %v4514_v44, %v2136_v60  ;;  %v2134_v50 = vadd.f32 %v2070_v12, %v2006_v26  ;;  %v2121_v26 = vmul.f32 %v4569_v62, %v2120_v28  ;;  %vm2021_vm8 = vcmp.ne.f32.partialorder %v4544_v56, %v4544_v56 }
 0x5a7   : > { %v2914_v11 = vpop.eup %2913  ;;  %2458 = vrot.lane.b32.xlu0 %v2144_v37, %s2984_s23  ;;  %v2097_v46 = vsel %vm2096_vm4, %v2094_v7, %v2091_v38  ;;  %v2253_v57 = vpop.permute.xlu0 %2252 }
 0x5a8   : > { %v2137_v44 = vadd.f32 %v2097_v46, %v2009_v40  ;;  %v2073_v32 = vmul.f32 0.6931472, %v2914_v11  ;;  %v2142_v45 = vsel %vm2014_vm2, %v4517_v9, %v2134_v50  ;;  %v2131_v9 = vand.u32 2147483647, %v4572_v14  ;;  %vm4853_vm2 = vmmov %vm4852_vm9 }
 0x5a9   : > { %v2916_v1 = vpop.eup %2915  ;;  %vm4854_vm10 = vmmov %vm4853_vm2 }
 0x5aa   : > { %v2918_v58 = vpop.eup %2917  ;;  %v2145_v40 = vsel %vm2017_vm3, %v4520_v10, %v2137_v44  ;;  %v2079_v15 = vsel %vm2078_vm7, %v2076_v0, %v2073_v32  ;;  %v2118_v41 = vmul.f32 0.6931472, %v2916_v1  ;;  %vm2132_vm0 = vcmp.lt.f32.partialorder %v2131_v9, 0.0004427343  ;;  %vm4855_vm3 = vmmov %vm4853_vm2 }
 0x5ab   : > { %2460 = vrot.lane.b32.xlu1 %v2145_v40, %s2984_s23  ;;  %2454 = vrot.lane.b32.xlu0 %v2142_v45, %s2984_s23  ;;  %v2135_v62 = vadd.f32 %v2079_v15, %v2007_v43  ;;  %v2100_v39 = vmul.f32 0.6931472, %v2918_v58  ;;  %v2257_v18 = vpop.permute.xlu0 %2256  ;;  %vm4856_vm4 = vmmov %vm4853_vm2 }
 0x5ac   : > { %v2920_v22 = vpop.eup %2919  ;;  %v2124_v43 = vsel %vm4626_vm11, %v2121_v26, %v2118_v41  ;;  %vm4857_vm7 = vmmov %vm4853_vm2 }
 0x5ad   : > { %v2106_v36 = vsel %vm4608_vm15, %v2103_v13, %v2100_v39  ;;  %v2143_v63 = vsel %vm2015_vm12, %v4523_v23, %v2135_v62  ;;  %v2127_v30 = vmul.f32 0.6931472, %v2920_v22  ;;  %v2140_v23 = vadd.f32 %v2124_v43, %v2012_v55  ;;  %vm4858_vm15 = vmmov %vm4853_vm2 }
 0x5ae   : > { %v2922_v53 = vpop.eup %2921  ;;  %v2138_v35 = vadd.f32 %v2106_v36, %v2010_v24  ;;  %vm4859_vm11 = vmmov %vm4853_vm2 }
 0x5af   : > { %2456 = vrot.lane.b32.xlu1 %v2143_v63, %s2984_s23  ;;  %v2109_v2 = vmul.f32 0.6931472, %v2922_v53  ;;  %v2133_v6 = vsel %vm2132_vm0, %v2130_v29, %v2127_v30  ;;  %v2148_v14 = vsel %vm2020_vm6, %v4529_v48, %v2140_v23  ;;  %v2858_v48 = vld [vmem:[%s4713_s3 + $0x40] sm:$0xff]   ;;  %v2261_v19 = vpop.permute.xlu0 %2260 }
 0x5b0   : > { %v2146_v33 = vsel %vm2018_vm13, %v4532_v31, %v2138_v35  ;;  %v2141_v55 = vadd.f32 %v2133_v6, %v2013_v20  ;;  %v2251_v20 = vpop.permute.xlu1 %2250 }
 0x5b1   : > { %2462 = vrot.lane.b32.xlu0 %v2146_v33, %s2984_s23  ;;  %v2115_v24 = vsel %vm2114_vm5, %v2112_v52, %v2109_v2 }
 0x5b2   : > { %v2139_v34 = vadd.f32 %v2115_v24, %v2011_v25  ;;  %v2149_v25 = vsel %vm2021_vm8, %v4544_v56, %v2141_v55 }
 0x5b4   : > { %v2147_v31 = vsel %vm2019_vm14, %v4549_v49, %v2139_v34  ;;  %v2857_v49 = vld [vmem:[%s4713_s3 + $0x48] sm:$0xff]   ;;  %v2255_v59 = vpop.permute.xlu1 %2254 }
 0x5b5   : > { %2464 = vrot.lane.b32.xlu1 %v2147_v31, %s2984_s23  ;;  %2466 = vrot.lane.b32.xlu0 %v2148_v14, %s2984_s23 }
 0x5b6   : > { %2772 = vmatprep.subr.bf16.mxu0 %v2857_v49 }
 0x5b7   : > { %2773 = vmatpush3.bf16.msra.mxu0 %v2857_v49 }
 0x5b8   : > { %2774 = vmatprep.subr.bf16.mxu0 %v2858_v48  ;;  %v2259_v27 = vpop.permute.xlu1 %2258 }
 0x5b9   : > { %2468 = vrot.lane.b32.xlu1 %v2149_v25, %s2984_s23 }
 0x5bb   : > { %2775 = vmatpush3.bf16.msra.mxu0 %v2858_v48 }
 0x5bc   : > { %v2263_v44 = vpop.permute.xlu1 %2262 }
 0x648   : > { %v2766_v8 = vpop.f32.mrf.mxu1 }
 0x649   : > { %v2274_v38 = vadd.f32 %v2766_v8, %v2253_v57 }
 0x64a   : > { %v2217_v56 = vpop.f32.mrf.mxu1 }
 0x64b   : > { %v2272_v7 = vadd.f32 %v2249_v47, %v2217_v56  ;;  %v2282_v50 = vmax.f32 %v2274_v38, 0.0 }
 0x64c   : > { %v2767_v60 = vpop.f32.mrf.mxu1 }
 0x64d   : > { %v2275_v5 = vadd.f32 %v2767_v60, %v2255_v59  ;;  %v2280_v11 = vmax.f32 %v2272_v7, 0.0  ;;  %v2459_v7 = vpop.permute.xlu0 %2458 }
 0x64e   : > { %v2220_v54 = vpop.f32.mrf.mxu1 }
 0x64f   : > { %v2273_v28 = vadd.f32 %v2251_v20, %v2220_v54  ;;  %v2283_v37 = vmax.f32 %v2275_v5, 0.0 }
 0x650   : > { %v2770_v12 = vpop.f32.mrf.mxu1 }
 0x651   : > { %v2281_v46 = vmax.f32 %v2273_v28, 0.0  ;;  %v2294_v32 = vpack.c.bf16 %v2283_v37, %v2282_v50  ;;  %v2278_v21 = vadd.f32 %v2770_v12, %v2261_v19  ;;  %v2455_v12 = vpop.permute.xlu0 %2454 }
 0x652   : > { %v2233_v16 = vpop.f32.mrf.mxu1 }
 0x653   : > { %v2293_v42 = vpack.c.bf16 %v2281_v46, %v2280_v11  ;;  %v2276_v1 = vadd.f32 %v2257_v18, %v2233_v16  ;;  %v2286_v41 = vmax.f32 %v2278_v21, 0.0  ;;  %v2461_v18 = vpop.permute.xlu1 %2460 }
 0x654   : > { %v2771_v0 = vpop.f32.mrf.mxu1 }
 0x655   : > { %2776 = vmatprep.mubr.msk.bf16.mxu0 %vm1660_vm1, %v2293_v42  ;;  %v2279_v13 = vadd.f32 %v2771_v0, %v2263_v44  ;;  %v2284_v45 = vmax.f32 %v2276_v1, 0.0  ;;  %v2463_v44 = vpop.permute.xlu0 %2462 }
 0x656   : > { %2777 = vmatmul.mubr.msk.bf16.vlgmr.msra.gmra.mxu0 %vm1660_vm1, %v2294_v32  ;;  %v2236_v26 = vpop.f32.mrf.mxu1 }
 0x657   : > { %v2277_v58 = vadd.f32 %v2259_v27, %v2236_v26  ;;  %v2287_v40 = vmax.f32 %v2279_v13, 0.0  ;;  %v2457_v42 = vpop.permute.xlu1 %2456 }
 0x659   : > { %v2285_v15 = vmax.f32 %v2277_v58, 0.0  ;;  %v2296_v39 = vpack.c.bf16 %v2287_v40, %v2286_v41  ;;  %v2467_v58 = vpop.permute.xlu0 %2466 }
 0x65b   : > { %v2295_v62 = vpack.c.bf16 %v2285_v15, %v2284_v45  ;;  %v2465_v13 = vpop.permute.xlu1 %2464 }
 0x65d   : > { %2780 = vmatprep.mubr.msk.bf16.mxu0 %vm1660_vm1, %v2295_v62 }
 0x65e   : > { %2781 = vmatmul.mubr.msk.bf16.gmra.mxu0 %vm1660_vm1, %v2296_v39  ;;  %vm2486_vm1 = vcmask 31744  }
 0x65f   : > { %v2469_v62 = vpop.permute.xlu1 %2468 }
 0x716   : > { %v2778_v61 = vpop.f32.mrf.mxu0 }
 0x717   : > { %v2392_v10 = vadd.f32 %v2778_v61, %v2389_v51 }
 0x718   : > { %v2355_v9 = vpop.f32.mrf.mxu0 }
 0x719   : > { %v2662_v22 = vmul.f32 -1.442695, %v2392_v10  ;;  %v2390_v36 = vadd.f32 %v2389_v51, %v2355_v9 }
 0x71a   : > { %v2779_v43 = vpop.f32.mrf.mxu0 }
 0x71b   : > { %2923 = vpow2.f32 %v2662_v22  ;;  %v2660_v53 = vmul.f32 -1.442695, %v2390_v36  ;;  %v2393_v63 = vadd.f32 %v2779_v43, %v2389_v51 }
 0x71c   : > { %v2358_v35 = vpop.f32.mrf.mxu0 }
 0x71d   : > { %2925 = vpow2.f32 %v2660_v53  ;;  %v2663_v30 = vmul.f32 -1.442695, %v2393_v63  ;;  %v2391_v2 = vadd.f32 %v2389_v51, %v2358_v35 }
 0x71e   : > { %v2782_v52 = vpop.f32.mrf.mxu0 }
 0x71f   : > { %2927 = vpow2.f32 %v2663_v30  ;;  %v2661_v29 = vmul.f32 -1.442695, %v2391_v2  ;;  %v2396_v33 = vadd.f32 %v2782_v52, %v2389_v51 }
 0x720   : > { %v2371_v3 = vpop.f32.mrf.mxu0 }
 0x721   : > { %2929 = vpow2.f32 %v2661_v29  ;;  %v2666_v4 = vmul.f32 -1.442695, %v2396_v33  ;;  %v2394_v23 = vadd.f32 %v2389_v51, %v2371_v3 }
 0x722   : > { %v2783_v24 = vpop.f32.mrf.mxu0 }
 0x723   : > { %2931 = vpow2.f32 %v2666_v4  ;;  %v2664_v6 = vmul.f32 -1.442695, %v2394_v23  ;;  %v2397_v34 = vadd.f32 %v2783_v24, %v2389_v51 }
 0x724   : > { %v2374_v31 = vpop.f32.mrf.mxu0 }
 0x725   : > { %2933 = vpow2.f32 %v2664_v6  ;;  %v2667_v14 = vmul.f32 -1.442695, %v2397_v34  ;;  %v2395_v55 = vadd.f32 %v2389_v51, %v2374_v31 }
 0x727   : > { %2935 = vpow2.f32 %v2667_v14  ;;  %v2665_v25 = vmul.f32 -1.442695, %v2395_v55 }
 0x728   : > { %v2924_v49 = vpop.eup %2923 }
 0x729   : > { %v2424_v48 = vadd.f32 1.0, %v2924_v49  ;;  %2937 = vpow2.f32 %v2665_v25 }
 0x72a   : > { %v2926_v20 = vpop.eup %2925 }
 0x72b   : > { %2939 = vrcp.f32 %v2424_v48  ;;  %v2422_v47 = vadd.f32 1.0, %v2926_v20 }
 0x72c   : > { %v2928_v59 = vpop.eup %2927 }
 0x72d   : > { %2941 = vrcp.f32 %v2422_v47  ;;  %v2425_v8 = vadd.f32 1.0, %v2928_v59 }
 0x72e   : > { %v2930_v57 = vpop.eup %2929 }
 0x72f   : > { %2943 = vrcp.f32 %v2425_v8  ;;  %v2423_v56 = vadd.f32 1.0, %v2930_v57 }
 0x730   : > { %v2932_v60 = vpop.eup %2931 }
 0x731   : > { %2945 = vrcp.f32 %v2423_v56  ;;  %v2428_v5 = vadd.f32 1.0, %v2932_v60 }
 0x732   : > { %v2934_v27 = vpop.eup %2933 }
 0x733   : > { %2947 = vrcp.f32 %v2428_v5  ;;  %v2426_v38 = vadd.f32 1.0, %v2934_v27 }
 0x734   : > { %v2936_v54 = vpop.eup %2935 }
 0x735   : > { %2949 = vrcp.f32 %v2426_v38  ;;  %v2429_v28 = vadd.f32 1.0, %v2936_v54 }
 0x736   : > { %v2938_v37 = vpop.eup %2937 }
 0x737   : > { %2951 = vrcp.f32 %v2429_v28  ;;  %v2427_v11 = vadd.f32 1.0, %v2938_v37 }
 0x738   : > { %v2940_v46 = vpop.eup %2939 }
 0x739   : > { %v2480_v50 = vsel %vm4852_vm9, %v2940_v46, %v2459_v7  ;;  %2953 = vrcp.f32 %v2427_v11 }
 0x73a   : > { %v2942_v16 = vpop.eup %2941  ;;  %2489 = vst.msk [vmem:[%s4681_s30 + $0x10] sm:$0xff] %vm2486_vm1, %v2480_v50 }
 0x73b   : > { %v2478_v32 = vsel %vm4853_vm2, %v2942_v16, %v2455_v12 }
 0x73c   : > { %v2944_v0 = vpop.eup %2943  ;;  %2487 = vst.msk [vmem:[%s4681_s30] sm:$0xff] %vm2486_vm1, %v2478_v32 }
 0x73d   : > { %v2481_v19 = vsel %vm4854_vm10, %v2944_v0, %v2461_v18 }
 0x73e   : > { %v2946_v1 = vpop.eup %2945  ;;  %2490 = vst.msk [vmem:[%s4681_s30 + $0x18] sm:$0xff] %vm2486_vm1, %v2481_v19 }
 0x73f   : > { %v2479_v21 = vsel %vm4855_vm3, %v2946_v1, %v2457_v42 }
 0x740   : > { %v2948_v26 = vpop.eup %2947  ;;  %2488 = vst.msk [vmem:[%s4681_s30 + $0x8] sm:$0xff] %vm2486_vm1, %v2479_v21 }
 0x741   : > { %v2484_v40 = vsel %vm4856_vm4, %v2948_v26, %v2467_v58 }
 0x742   : > { %v2950_v45 = vpop.eup %2949  ;;  %2493 = vst.msk [vmem:[%s4681_s30 + $0x30] sm:$0xff] %vm2486_vm1, %v2484_v40 }
 0x743   : > { %v2482_v15 = vsel %vm4857_vm7, %v2950_v45, %v2463_v44 }
 0x744   : > { %v2952_v41 = vpop.eup %2951  ;;  %2491 = vst.msk [vmem:[%s4681_s30 + $0x20] sm:$0xff] %vm2486_vm1, %v2482_v15 }
 0x745   : > { %v2485_v39 = vsel %vm4858_vm15, %v2952_v41, %v2469_v62 }
 0x746   : > { %v2954_v17 = vpop.eup %2953  ;;  %2494 = vst.msk [vmem:[%s4681_s30 + $0x38] sm:$0xff] %vm2486_vm1, %v2485_v39 }
 0x747   : > { %v2483_v51 = vsel %vm4859_vm11, %v2954_v17, %v2465_v13 }
 0x748   : > { %2492 = vst.msk [vmem:[%s4681_s30 + $0x28] sm:$0xff] %vm2486_vm1, %v2483_v51 }
 0x749 PF: > { %s15_s18 = sadd.s32 1, %s2962_s18  }
 0x74a   : > { %p12_p4 = scmp.ge.s32.totalorder %s15_s18, 4  }
 0x74c   :  { %14 = sbr.rel (!%p12_p4) target bundleno = 1 (0x1), region = 77 }

</bundles_post_ra>
